<compile_context>
chip_gen: v7x
topology: tpu7x:2x2x1
jax: 0.10.0
libtpu: 0.0.40
codegen_flags: <defaults>
</compile_context>

<pallas_src>
import functools

import jax
import jax.numpy as jnp
from jax.experimental import pallas as pl
from jax.experimental.pallas import tpu as pltpu


def _encoder_kernel(x_ref, w1_ref, b1_ref, w2_ref, b2_ref, out_ref, *, L, K, normalize):
    # x_ref  : (B*L, C)    bf16  flattened batch (row r = sample r//L, step r%L)
    # w1_ref : (K*C, Hp)   bf16  conv weights, tap-major rows (row k*C+c = w[:, c, k])
    # b1_ref : (1, Hp)     f32
    # w2_ref : (Hp, Dp)    bf16  projection head
    # b2_ref : (1, Dp)     f32
    # out_ref: (B, Dp)     f32
    BL, C = x_ref.shape
    Hp = w1_ref.shape[1]
    Dp = w2_ref.shape[1]
    B = BL // L
    pad = (K - 1) // 2

    # Shifted-tap construction is done in f32 (robust sublane shuffles); the MXU operand
    # is cast back to bf16 right before the dot (values are exactly bf16-representable).
    xf = x_ref[...].astype(jnp.float32)                                   # (BL, C)
    pos = jax.lax.broadcasted_iota(jnp.int32, (BL, 1), 0) % L             # step within sample

    taps = []
    for k in range(K):                                                     # static K
        d = k - pad
        if d == 0:
            taps.append(xf)
        else:
            if d > 0:
                xk = jnp.concatenate(
                    [xf[d:, :], jnp.zeros((d, C), jnp.float32)], axis=0)
            else:
                xk = jnp.concatenate(
                    [jnp.zeros((-d, C), jnp.float32), xf[:BL + d, :]], axis=0)
            # per-sample 'same' zero padding: rows whose tap falls outside [0, L)
            valid = jnp.logical_and(pos + d >= 0, pos + d < L)             # (BL, 1)
            taps.append(jnp.where(valid, xk, 0.0))

    # In-VMEM im2col: one lane-concatenated operand -> single conv matmul.
    x_taps = taps[0] if K == 1 else jnp.concatenate(taps, axis=-1)         # (BL, K*C)

    acc = jnp.dot(x_taps.astype(jnp.bfloat16), w1_ref[...],
                  preferred_element_type=jnp.float32)                      # (BL, Hp)

    h = jnp.maximum(acc + b1_ref[...], 0.0)                                # conv + bias + ReLU
    pooled = jnp.mean(h.reshape(B, L, Hp), axis=1)                         # (B, Hp) mean over L

    z = jnp.dot(pooled.astype(w2_ref.dtype), w2_ref[...],
                preferred_element_type=jnp.float32) + b2_ref[...]          # (B, Dp)

    if normalize:
        # F.normalize: x / max(||x||_2, eps)  ==  x * rsqrt(max(sumsq, eps^2))  (EUP rsqrt)
        sumsq = jnp.sum(z * z, axis=-1, keepdims=True)
        z = z * jax.lax.rsqrt(jnp.maximum(sumsq, 1e-24))

    out_ref[...] = z.astype(out_ref.dtype)


def _round_up(a, m):
    return (a + m - 1) // m * m


def timeclr_encode(ts, w_conv, b_conv, w_fc, b_fc, *, normalize=True, block_samples=128):
    """ts: (N, C_in, L) float32.  Returns (N, out_dim) float32 embeddings."""
    N, C, L = ts.shape
    H, C_w, K = w_conv.shape
    assert C_w == C
    Dout = w_fc.shape[0]

    # Lane-dense padded widths and per-step sample batch (multiple of 16 for bf16 sublanes).
    Hp = _round_up(H, 128)
    Dp = _round_up(Dout, 128)
    B = _round_up(min(block_samples, _round_up(N, 16)), 16)
    # Keep the per-step VMEM working set comfortably inside the scoped limit on all chips.
    per_sample_bytes = (
        L * C * (2 * 2 + 4 * (2 * K + 1))   # x bf16 (double-buffered) + f32 taps/im2col
        + 2 * L * Hp * 4                    # conv accumulator + activations
        + 2 * Dp * 4)                       # head output (double-buffered)
    while B > 16 and B * per_sample_bytes > 8 * 1024 * 1024:
        B = _round_up(B // 2, 16)
    Npad = _round_up(N, B)
    grid = (Npad // B,)

    # ---- glue: NCL -> (N*L, C) bf16, pad batch to a multiple of B ----
    x = jnp.transpose(ts, (0, 2, 1)).astype(jnp.bfloat16)                  # (N, L, C)
    if Npad != N:
        x = jnp.pad(x, ((0, Npad - N), (0, 0), (0, 0)))
    x = x.reshape(Npad * L, C)                                             # (Npad*L, C)

    # ---- glue: weights in matmul form, zero-padded to lane-dense widths ----
    # conv weights (H, C, K) -> tap-major (K*C, Hp) so rows match the in-kernel im2col order.
    w1 = jnp.transpose(w_conv, (2, 1, 0)).reshape(K * C, H)                # row k*C+c = w[:,c,k]
    w1 = jnp.pad(w1, ((0, 0), (0, Hp - H))).astype(jnp.bfloat16)           # (K*C, Hp)
    b1 = jnp.pad(b_conv, (0, Hp - H)).reshape(1, Hp).astype(jnp.float32)
    w2 = jnp.pad(w_fc.T, ((0, Hp - H), (0, Dp - Dout))).astype(jnp.bfloat16)  # (Hp, Dp)
    b2 = jnp.pad(b_fc, (0, Dp - Dout)).reshape(1, Dp).astype(jnp.float32)

    BL = B * L
    flops = 2 * Npad * L * (K * C) * Hp + 2 * Npad * Hp * Dp
    bytes_accessed = (x.size * 2 + w1.size * 2 + w2.size * 2
                      + b1.size * 4 + b2.size * 4 + Npad * Dp * 4)

    kernel = functools.partial(_encoder_kernel, L=L, K=K, normalize=normalize)

    out = pl.pallas_call(
        kernel,
        out_shape=jax.ShapeDtypeStruct((Npad, Dp), jnp.float32),
        grid_spec=pltpu.PrefetchScalarGridSpec(
            num_scalar_prefetch=0,
            grid=grid,
            in_specs=[
                pl.BlockSpec((BL, C), lambda i: (i, 0)),        # activations, streamed
                pl.BlockSpec((K * C, Hp), lambda i: (0, 0)),    # conv weights, resident
                pl.BlockSpec((1, Hp), lambda i: (0, 0)),
                pl.BlockSpec((Hp, Dp), lambda i: (0, 0)),
                pl.BlockSpec((1, Dp), lambda i: (0, 0)),
            ],
            out_specs=pl.BlockSpec((B, Dp), lambda i: (i, 0)),
        ),
        compiler_params=pltpu.CompilerParams(
            dimension_semantics=("parallel",),
            vmem_limit_bytes=32 * 1024 * 1024),
        cost_estimate=pl.CostEstimate(
            flops=flops, transcendentals=Npad, bytes_accessed=bytes_accessed),
    )(x, w1, b1, w2, b2)

    return out[:N, :Dout]


def _reference(ts, w_conv, b_conv, w_fc, b_fc, *, normalize=True):
    """Pure-JAX reference with the same bf16 operand rounding as the kernel (f32 accumulate)."""
    N, C, L = ts.shape
    H, _, K = w_conv.shape
    pad = (K - 1) // 2
    x = jnp.transpose(ts, (0, 2, 1)).astype(jnp.bfloat16).astype(jnp.float32)   # (N, L, C)
    w1 = w_conv.astype(jnp.bfloat16).astype(jnp.float32)                        # (H, C, K)
    x_pad = jnp.pad(x, ((0, 0), (pad, pad), (0, 0)))
    h = jnp.zeros((N, L, H), jnp.float32)
    for k in range(K):
        h = h + jnp.einsum("nlc,hc->nlh", x_pad[:, k:k + L, :], w1[:, :, k],
                           precision=jax.lax.Precision.HIGHEST)
    h = jnp.maximum(h + b_conv[None, None, :], 0.0)
    pooled = jnp.mean(h, axis=1)                                                # (N, H)
    pooled_b = pooled.astype(jnp.bfloat16).astype(jnp.float32)
    w2 = w_fc.T.astype(jnp.bfloat16).astype(jnp.float32)                        # (H, Dout)
    z = jnp.dot(pooled_b, w2, precision=jax.lax.Precision.HIGHEST) + b_fc[None, :]
    if normalize:
        sumsq = jnp.sum(z * z, axis=-1, keepdims=True)
        z = z * jax.lax.rsqrt(jnp.maximum(sumsq, 1e-24))
    return z


if __name__ == "__main__":
    # Small shapes consistent with (N, C_in, L_in) -> (N, C_out)
    N, C_in, L = 2, 4, 16
    H, out_dim, K = 32, 32, 3

    key = jax.random.PRNGKey(0)
    k_ts, k_w1, k_b1, k_w2, k_b2 = jax.random.split(key, 5)

    ts = jax.random.normal(k_ts, (N, C_in, L), dtype=jnp.float32)
    w_conv = 0.1 * jax.random.normal(k_w1, (H, C_in, K), dtype=jnp.float32)
    b_conv = 0.1 * jax.random.normal(k_b1, (H,), dtype=jnp.float32)
    w_fc = 0.1 * jax.random.normal(k_w2, (out_dim, H), dtype=jnp.float32)
    b_fc = 0.1 * jax.random.normal(k_b2, (out_dim,), dtype=jnp.float32)

    emb = timeclr_encode(ts, w_conv, b_conv, w_fc, b_fc, normalize=True)
    emb = jax.block_until_ready(emb)
    assert emb.shape == (N, out_dim)

    ref = _reference(ts, w_conv, b_conv, w_fc, b_fc, normalize=True)
    err = jnp.max(jnp.abs(emb - ref))
    assert jnp.allclose(emb, ref, atol=1e-3, rtol=1e-3), f"mismatch vs reference, max abs err={err}"

    print("KERNEL_OK")
</pallas_src>

<mosaic_0001>
module attributes {stable_mosaic.version = 11 : i64} {
  func.func @_encoder_kernel(%arg0: i32, %arg1: memref<256x4xbf16, #tpu.memory_space<vmem>>, %arg2: memref<12x128xbf16, #tpu.memory_space<vmem>>, %arg3: memref<1x128xf32, #tpu.memory_space<vmem>>, %arg4: memref<128x128xbf16, #tpu.memory_space<vmem>>, %arg5: memref<1x128xf32, #tpu.memory_space<vmem>>, %arg6: memref<16x128xf32, #tpu.memory_space<vmem>>) attributes {dimension_semantics = [#tpu.dimension_semantics<parallel>], iteration_bounds = array<i64: 1>, scalar_prefetch = 0 : i64, scratch_operands = 0 : i64, tpu.core_type = #tpu.core_type<tc>, window_params = [{transform_indices = @transform_0, window_bounds = array<i64: 256, 4>}, {pipeline_mode = #tpu.pipeline_mode<synchronous>, transform_indices = @transform_1, window_bounds = array<i64: 12, 128>}, {pipeline_mode = #tpu.pipeline_mode<synchronous>, transform_indices = @transform_2, window_bounds = array<i64: 1, 128>}, {pipeline_mode = #tpu.pipeline_mode<synchronous>, transform_indices = @transform_3, window_bounds = array<i64: 128, 128>}, {pipeline_mode = #tpu.pipeline_mode<synchronous>, transform_indices = @transform_4, window_bounds = array<i64: 1, 128>}, {transform_indices = @transform_5, window_bounds = array<i64: 16, 128>}]} {
    %c0 = arith.constant 0 : index
    %c0_0 = arith.constant 0 : index
    %0 = vector.load %arg1[%c0, %c0_0] : memref<256x4xbf16, #tpu.memory_space<vmem>>, vector<256x4xbf16>
    %1 = arith.extf %0 : vector<256x4xbf16> to vector<256x4xf32>
    %2 = tpu.iota {dimensions = array<i32: 0>} : vector<256x1xi32>
    %c16_i32 = arith.constant 16 : i32
    %c0_i32 = arith.constant 0 : i32
    %3 = arith.cmpi eq, %c16_i32, %c0_i32 : i32
    %c1_i32 = arith.constant 1 : i32
    %4 = arith.select %3, %c1_i32, %c16_i32 : i32
    %5 = vector.broadcast %4 : i32 to vector<256x1xi32>
    %6 = arith.remsi %2, %5 : vector<256x1xi32>
    %c0_i32_1 = arith.constant 0 : i32
    %7 = vector.broadcast %c0_i32_1 : i32 to vector<256x1xi32>
    %8 = arith.cmpi ne, %6, %7 : vector<256x1xi32>
    %c0_i32_2 = arith.constant 0 : i32
    %9 = vector.broadcast %c0_i32_2 : i32 to vector<256x1xi32>
    %10 = arith.cmpi slt, %6, %9 : vector<256x1xi32>
    %c0_i32_3 = arith.constant 0 : i32
    %11 = arith.cmpi slt, %4, %c0_i32_3 : i32
    %12 = vector.broadcast %11 : i1 to vector<256x1xi1>
    %13 = vector.broadcast %12 : vector<256x1xi1> to vector<256x1xi1>
    %14 = arith.xori %10, %13 : vector<256x1xi1>
    %15 = arith.andi %14, %8 : vector<256x1xi1>
    %16 = vector.broadcast %4 : i32 to vector<256x1xi32>
    %17 = arith.addi %6, %16 : vector<256x1xi32>
    %18 = arith.select %15, %17, %6 : vector<256x1xi1>, vector<256x1xi32>
    %cst = arith.constant 0.000000e+00 : f32
    %19 = vector.broadcast %cst : f32 to vector<1x4xf32>
    %20 = vector.extract_strided_slice %1 {offsets = [0, 0], sizes = [255, 4], strides = [1, 1]} : vector<256x4xf32> to vector<255x4xf32>
    %21 = tpu.concatenate %19, %20 in 0 : vector<1x4xf32>, vector<255x4xf32> -> vector<256x4xf32>
    %c-1_i32 = arith.constant -1 : i32
    %22 = vector.broadcast %c-1_i32 : i32 to vector<256x1xi32>
    %23 = arith.addi %18, %22 : vector<256x1xi32>
    %c0_i32_4 = arith.constant 0 : i32
    %24 = vector.broadcast %c0_i32_4 : i32 to vector<256x1xi32>
    %25 = arith.cmpi sge, %23, %24 : vector<256x1xi32>
    %c-1_i32_5 = arith.constant -1 : i32
    %26 = vector.broadcast %c-1_i32_5 : i32 to vector<256x1xi32>
    %27 = arith.addi %18, %26 : vector<256x1xi32>
    %c16_i32_6 = arith.constant 16 : i32
    %28 = vector.broadcast %c16_i32_6 : i32 to vector<256x1xi32>
    %29 = arith.cmpi slt, %27, %28 : vector<256x1xi32>
    %30 = arith.andi %25, %29 : vector<256x1xi1>
    %cst_7 = arith.constant 0.000000e+00 : f32
    %31 = vector.shape_cast %30 : vector<256x1xi1> to vector<256x1xi1>
    %32 = vector.broadcast %31 : vector<256x1xi1> to vector<256x4xi1>
    %33 = vector.broadcast %cst_7 : f32 to vector<256x4xf32>
    %34 = arith.select %32, %21, %33 : vector<256x4xi1>, vector<256x4xf32>
    %35 = vector.extract_strided_slice %1 {offsets = [1, 0], sizes = [255, 4], strides = [1, 1]} : vector<256x4xf32> to vector<255x4xf32>
    %cst_8 = arith.constant 0.000000e+00 : f32
    %36 = vector.broadcast %cst_8 : f32 to vector<1x4xf32>
    %37 = tpu.concatenate %35, %36 in 0 : vector<255x4xf32>, vector<1x4xf32> -> vector<256x4xf32>
    %c1_i32_9 = arith.constant 1 : i32
    %38 = vector.broadcast %c1_i32_9 : i32 to vector<256x1xi32>
    %39 = arith.addi %18, %38 : vector<256x1xi32>
    %c0_i32_10 = arith.constant 0 : i32
    %40 = vector.broadcast %c0_i32_10 : i32 to vector<256x1xi32>
    %41 = arith.cmpi sge, %39, %40 : vector<256x1xi32>
    %c1_i32_11 = arith.constant 1 : i32
    %42 = vector.broadcast %c1_i32_11 : i32 to vector<256x1xi32>
    %43 = arith.addi %18, %42 : vector<256x1xi32>
    %c16_i32_12 = arith.constant 16 : i32
    %44 = vector.broadcast %c16_i32_12 : i32 to vector<256x1xi32>
    %45 = arith.cmpi slt, %43, %44 : vector<256x1xi32>
    %46 = arith.andi %41, %45 : vector<256x1xi1>
    %cst_13 = arith.constant 0.000000e+00 : f32
    %47 = vector.shape_cast %46 : vector<256x1xi1> to vector<256x1xi1>
    %48 = vector.broadcast %47 : vector<256x1xi1> to vector<256x4xi1>
    %49 = vector.broadcast %cst_13 : f32 to vector<256x4xf32>
    %50 = arith.select %48, %37, %49 : vector<256x4xi1>, vector<256x4xf32>
    %51 = tpu.concatenate %34, %1, %50 in 1 : vector<256x4xf32>, vector<256x4xf32>, vector<256x4xf32> -> vector<256x12xf32>
    %52 = arith.truncf %51 : vector<256x12xf32> to vector<256x12xbf16>
    %c0_14 = arith.constant 0 : index
    %c0_15 = arith.constant 0 : index
    %53 = vector.load %arg2[%c0_14, %c0_15] : memref<12x128xbf16, #tpu.memory_space<vmem>>, vector<12x128xbf16>
    %cst_16 = arith.constant dense<0.000000e+00> : vector<256x128xf32>
    %54 = tpu.matmul %52, %53, %cst_16 {dimension_numbers = #tpu.dot_dimension_numbers<[1], [0], [0], [1], [0, 0, 1, 1], [], []>} : vector<256x12xbf16>, vector<12x128xbf16>, vector<256x128xf32> -> vector<256x128xf32>
    %c0_17 = arith.constant 0 : index
    %c0_18 = arith.constant 0 : index
    %55 = vector.load %arg3[%c0_17, %c0_18] : memref<1x128xf32, #tpu.memory_space<vmem>>, vector<1x128xf32>
    %56 = vector.broadcast %55 : vector<1x128xf32> to vector<256x128xf32>
    %57 = arith.addf %54, %56 : vector<256x128xf32>
    %cst_19 = arith.constant 0.000000e+00 : f32
    %58 = vector.broadcast %cst_19 : f32 to vector<256x128xf32>
    %59 = arith.maximumf %57, %58 : vector<256x128xf32>
    %60 = vector.shape_cast %59 : vector<256x128xf32> to vector<16x16x128xf32>
    %cst_20 = arith.constant dense<0.000000e+00> : vector<16x128xf32>
    %61 = vector.multi_reduction <add>, %60, %cst_20 [1] : vector<16x16x128xf32> to vector<16x128xf32>
    %cst_21 = arith.constant 1.600000e+01 : f32
    %62 = vector.broadcast %cst_21 : f32 to vector<16x128xf32>
    %63 = arith.divf %61, %62 : vector<16x128xf32>
    %64 = arith.truncf %63 : vector<16x128xf32> to vector<16x128xbf16>
    %c0_22 = arith.constant 0 : index
    %c0_23 = arith.constant 0 : index
    %65 = vector.load %arg4[%c0_22, %c0_23] : memref<128x128xbf16, #tpu.memory_space<vmem>>, vector<128x128xbf16>
    %cst_24 = arith.constant dense<0.000000e+00> : vector<16x128xf32>
    %66 = tpu.matmul %64, %65, %cst_24 {dimension_numbers = #tpu.dot_dimension_numbers<[1], [0], [0], [1], [0, 0, 1, 1], [], []>} : vector<16x128xbf16>, vector<128x128xbf16>, vector<16x128xf32> -> vector<16x128xf32>
    %c0_25 = arith.constant 0 : index
    %c0_26 = arith.constant 0 : index
    %67 = vector.load %arg5[%c0_25, %c0_26] : memref<1x128xf32, #tpu.memory_space<vmem>>, vector<1x128xf32>
    %68 = vector.broadcast %67 : vector<1x128xf32> to vector<16x128xf32>
    %69 = arith.addf %66, %68 : vector<16x128xf32>
    %70 = arith.mulf %69, %69 : vector<16x128xf32>
    %cst_27 = arith.constant dense<0.000000e+00> : vector<16xf32>
    %71 = vector.multi_reduction <add>, %70, %cst_27 [1] : vector<16x128xf32> to vector<16xf32>
    %72 = vector.shape_cast %71 : vector<16xf32> to vector<16x1xf32>
    %cst_28 = arith.constant 1.000000e-24 : f32
    %73 = vector.broadcast %cst_28 : f32 to vector<16x1xf32>
    %74 = arith.maximumf %72, %73 : vector<16x1xf32>
    %75 = math.rsqrt %74 : vector<16x1xf32>
    %76 = vector.broadcast %75 : vector<16x1xf32> to vector<16x128xf32>
    %77 = arith.mulf %69, %76 : vector<16x128xf32>
    %c0_29 = arith.constant 0 : index
    %c0_30 = arith.constant 0 : index
    %78 = vector.load %arg6[%c0_29, %c0_30] : memref<16x128xf32, #tpu.memory_space<vmem>>, vector<16x128xf32>
    tpu.vector_store %arg6[%c0_29, %c0_30], %77 {strides = array<i32>} : memref<16x128xf32, #tpu.memory_space<vmem>>, vector<16x128xf32>,
    return
  }
  func.func @transform_0(%arg0: i32) -> (i32, i32) {
    %c0_i32 = arith.constant 0 : i32
    %c0_i32_0 = arith.constant 0 : i32
    return %arg0, %c0_i32 : i32, i32
  }
  func.func @transform_1(%arg0: i32) -> (i32, i32) {
    %c0_i32 = arith.constant 0 : i32
    %c0_i32_0 = arith.constant 0 : i32
    %c0_i32_1 = arith.constant 0 : i32
    return %c0_i32, %c0_i32_0 : i32, i32
  }
  func.func @transform_2(%arg0: i32) -> (i32, i32) {
    %c0_i32 = arith.constant 0 : i32
    %c0_i32_0 = arith.constant 0 : i32
    %c0_i32_1 = arith.constant 0 : i32
    return %c0_i32, %c0_i32_0 : i32, i32
  }
  func.func @transform_3(%arg0: i32) -> (i32, i32) {
    %c0_i32 = arith.constant 0 : i32
    %c0_i32_0 = arith.constant 0 : i32
    %c0_i32_1 = arith.constant 0 : i32
    return %c0_i32, %c0_i32_0 : i32, i32
  }
  func.func @transform_4(%arg0: i32) -> (i32, i32) {
    %c0_i32 = arith.constant 0 : i32
    %c0_i32_0 = arith.constant 0 : i32
    %c0_i32_1 = arith.constant 0 : i32
    return %c0_i32, %c0_i32_0 : i32, i32
  }
  func.func @transform_5(%arg0: i32) -> (i32, i32) {
    %c0_i32 = arith.constant 0 : i32
    %c0_i32_0 = arith.constant 0 : i32
    return %arg0, %c0_i32 : i32, i32
  }
}

</mosaic_0001>

<bundles_post_ra>
// kernel: tpu_custom_call.1
= control target key start
LH: loop header
LB: loop body
LE: loop exit
PB: predicated region body
PF: predicated region fallthrough
CT: control target
= control target key end

     0   :  { %v86_v2 = vlaneseq  ;;  %vm856_vm0 = vcmask 1046528   ;;  %s2475_s26 = smov 4   ;;  %s2476_s8 = smov 8   ;;  %s3130_s0 = inlined_call_operand.vmem [shape: bf16[256,4], index: 0, kind: input, shape index: {}]   ;;  %s3131_s1 = inlined_call_operand.vmem [shape: bf16[12,128], index: 1, kind: input, shape index: {}]   ;;  %s3132_s2 = inlined_call_operand.vmem [shape: f32[1,128], index: 2, kind: input, shape index: {}]   ;;  %s3133_s3 = inlined_call_operand.vmem [shape: bf16[128,128], index: 3, kind: input, shape index: {}]   ;;  %s3134_s4 = inlined_call_operand.vmem [shape: f32[1,128], index: 4, kind: input, shape index: {}]   ;;  %s3135_s5 = inlined_call_operand.hbm [shape: f32[16,128], index: 5, kind: output, shape index: {}]  }
   0x1   :  { %v2113_v0 = vld [vmem:[%s3130_s0] sm:$0xff]   ;;  %v2176_v1 = vld [vmem:[%s3130_s0 + $0x8] sm:$0xff]   ;;  %v2177_v3 = vld [vmem:[%s3130_s0 + $0x10] sm:$0xff]  }
   0x2   :  { %v2520_v4 = vunpack.c.l.bf16 %v2113_v0  ;;  %v2522_v5 = vunpack.c.h.bf16 %v2113_v0  ;;  %v2524_v6 = vunpack.c.l.bf16 %v2176_v1  ;;  %v2526_v7 = vunpack.c.h.bf16 %v2176_v1  ;;  %v2178_v8 = vld [vmem:[%s3130_s0 + $0x18] sm:$0xff]   ;;  %v2179_v23 = vld [vmem:[%s3130_s0 + $0x20] sm:$0xff]   ;;  %v2180_v44 = vld [vmem:[%s3130_s0 + $0x28] sm:$0xff]  }
   0x3   :  { %v2531_v9 = vshrl.u32 %v86_v2, 7  ;;  %v2533_v10 = vunpack.c.l.bf16 %v2177_v3  ;;  %v2535_v11 = vunpack.c.h.bf16 %v2177_v3  ;;  %v2540_v14 = vunpack.c.l.bf16 %v2178_v8  ;;  %v2181_v49 = vld [vmem:[%s3130_s0 + $0x30] sm:$0xff]   ;;  %v2182_v0 = vld [vmem:[%s3130_s0 + $0x38] sm:$0xff]  }
   0x4   :  { %v2278_v12 = vpack.i.bf16 %v2522_v5, %v2520_v4  ;;  %v857_v13 = vrot.slane %v2520_v4, 1  ;;  %v2283_v15 = vpack.i.bf16 %v2526_v7, %v2524_v6  ;;  %v858_v17 = vrot.slane %v2522_v5, 1 }
   0x5   :  { %v88_v16 = vadd.s32 8, %v2531_v9  ;;  %v860_v18 = vrot.slane %v2524_v6, 1  ;;  %v90_v19 = vadd.s32 24, %v2531_v9  ;;  %v862_v20 = vrot.slane %v2526_v7, 1 }
   0x6   :  { %2279 = vrot.lane.b32.xlu0 %v2278_v12, %s2475_s26  ;;  %v864_v21 = vrot.slane %v2533_v10, 1  ;;  %v92_v22 = vadd.s32 40, %v2531_v9  ;;  %v859_v25 = vsel %vm856_vm0, %v857_v13, %v858_v17  ;;  %v2288_v26 = vpack.i.bf16 %v2535_v11, %v2533_v10 }
   0x7   :  { %v130_v24 = vand.u32 15, %v88_v16  ;;  %v866_v27 = vrot.slane %v2535_v11, 1  ;;  %v861_v28 = vsel %vm856_vm0, %v858_v17, %v860_v18  ;;  %v144_v29 = vand.u32 15, %v90_v19 }
   0x8   :  { %v863_v30 = vsel %vm856_vm0, %v860_v18, %v862_v20  ;;  %v158_v31 = vand.u32 15, %v92_v22  ;;  %v865_v33 = vsel %vm856_vm0, %v862_v20, %v864_v21  ;;  %v868_v35 = vrot.slane %v2540_v14, 1 }
   0x9   :  { %v954_v32 = vadd.s32 1, %v130_v24  ;;  %v867_v34 = vsel %vm856_vm0, %v864_v21, %v866_v27  ;;  %v956_v36 = vadd.s32 1, %v144_v29  ;;  %v2565_v38 = vunpack.c.h.bf16 %v2178_v8 }
   0xa   :  { %2284 = vrot.lane.b32.xlu0 %v2283_v15, %s2475_s26  ;;  %v958_v37 = vadd.s32 1, %v158_v31  ;;  %v2567_v39 = vunpack.c.l.bf16 %v2179_v23  ;;  %v869_v40 = vsel %vm856_vm0, %v866_v27, %v868_v35  ;;  %v2570_v41 = vunpack.c.h.bf16 %v2179_v23 }
   0xb   :  { %vm1018_vm1 = vcmp.lt.s32.totalorder %v954_v32, 16  ;;  %v94_v42 = vadd.s32 56, %v2531_v9  ;;  %vm1020_vm2 = vcmp.lt.s32.totalorder %v956_v36, 16  ;;  %v870_v52 = vrot.slane %v2565_v38, 1 }
   0xc   :  { %v1146_v43 = vsel %vm1018_vm1, %v861_v28, 0.0  ;;  %vm1022_vm3 = vcmp.lt.s32.totalorder %v958_v37, 16  ;;  %v1148_v46 = vsel %vm1020_vm2, %v865_v33, 0.0  ;;  %v872_v53 = vrot.slane %v2567_v39, 1 }
   0xd   :  { %v2293_v45 = vpack.i.bf16 %v1146_v43, %v859_v25  ;;  %v1150_v47 = vsel %vm1022_vm3, %v869_v40, 0.0  ;;  %v172_v48 = vand.u32 15, %v94_v42  ;;  %v2298_v50 = vpack.i.bf16 %v1148_v46, %v863_v30 }
   0xe   :  { %2289 = vrot.lane.b32.xlu0 %v2288_v26, %s2475_s26  ;;  %v2308_v51 = vpack.i.bf16 %v1150_v47, %v867_v34  ;;  %v2583_v55 = vunpack.c.l.bf16 %v2180_v44  ;;  %v96_v56 = vadd.s32 72, %v2531_v9  ;;  %v874_v57 = vrot.slane %v2570_v41, 1 }
   0xf   :  { %2294 = vrot.lane.b32.xlu1 %v2293_v45, %s2476_s8  ;;  %v960_v54 = vadd.s32 1, %v172_v48  ;;  %v873_v58 = vsel %vm856_vm0, %v870_v52, %v872_v53  ;;  %v2588_v59 = vunpack.c.h.bf16 %v2180_v44  ;;  %v2590_v60 = vunpack.c.l.bf16 %v2181_v49 }
  0x10   :  { %v2303_v61 = vpack.i.bf16 %v2565_v38, %v2540_v14  ;;  %v186_v62 = vand.u32 15, %v96_v56  ;;  %v876_v63 = vrot.slane %v2583_v55, 1  ;;  %v2313_v1 = vpack.i.bf16 %v2570_v41, %v2567_v39 }
  0x11   :  { %vm1024_vm4 = vcmp.lt.s32.totalorder %v960_v54, 16  ;;  %v871_v2 = vsel %vm856_vm0, %v868_v35, %v870_v52  ;;  %v2602_v3 = vunpack.c.h.bf16 %v2181_v49  ;;  %v98_v8 = vadd.s32 88, %v2531_v9 }
  0x12   :  { %2309 = vrot.lane.b32.xlu0 %v2308_v51, %s2476_s8 }
  0x13   :  { %10 = vsyncpa [#allocation3], 0  ;;  %2299 = vrot.lane.b32.xlu1 %v2298_v50, %s2476_s8  ;;  %v1152_v12 = vsel %vm1024_vm4, %v873_v58, 0.0  ;;  %v877_v13 = vsel %vm856_vm0, %v874_v57, %v876_v63  ;;  %v962_v15 = vadd.s32 1, %v186_v62  ;;  %v878_v16 = vrot.slane %v2588_v59, 1  ;;  %v2183_v24 = vld [vmem:[%s3130_s0 + $0x40] sm:$0xff]  }
  0x14   :  { %v875_v17 = vsel %vm856_vm0, %v872_v53, %v874_v57  ;;  %v200_v18 = vand.u32 15, %v98_v8  ;;  %v880_v19 = vrot.slane %v2590_v60, 1  ;;  %v2610_v20 = vunpack.c.l.bf16 %v2182_v0  ;;  %v2184_v36 = vld [vmem:[%s3130_s0 + $0x48] sm:$0xff]   ;;  %v2185_v53 = vld [vmem:[%s3130_s0 + $0x50] sm:$0xff]   ;;  %v2186_v8 = vld [vmem:[%s3130_s0 + $0x58] sm:$0xff]   ;;  %s2479_s21 = smov [#allocation2]  }
  0x15   :  { %vm1026_vm5 = vcmp.lt.s32.totalorder %v962_v15, 16  ;;  %v2323_v21 = vpack.i.bf16 %v2588_v59, %v2583_v55  ;;  %v100_v22 = vadd.s32 104, %v2531_v9  ;;  %v882_v23 = vrot.slane %v2602_v3, 1  ;;  %s2074_s22 = sshll.u32 %s2479_s21, 4  ;;  %s2075_s22 = int_to_ptr.vmem [resolvable:$true] %s2074_s22 }
  0x16   :  { %2314 = vrot.lane.b32.xlu0 %v2313_v1, %s2475_s26  ;;  %v2318_v25 = vpack.i.bf16 %v1152_v12, %v871_v2  ;;  %v1154_v26 = vsel %vm1026_vm5, %v877_v13, 0.0  ;;  %v964_v27 = vadd.s32 1, %v200_v18  ;;  %v884_v28 = vrot.slane %v2610_v20, 1  ;;  %p2456_p1 = scmp.lt.s32.totalorder %s2075_s22, %s2075_s22 }
  0x17   :  { %2304 = vrot.lane.b32.xlu1 %v2303_v61, %s2475_s26  ;;  %v2328_v29 = vpack.i.bf16 %v1154_v26, %v875_v17  ;;  %v881_v30 = vsel %vm856_vm0, %v878_v16, %v880_v19  ;;  %v214_v31 = vand.u32 15, %v100_v22  ;;  %v2623_v32 = vunpack.c.h.bf16 %v2182_v0 }
  0x18   :  { %v2338_v33 = vpack.i.bf16 %v2602_v3, %v2590_v60  ;;  %vm1028_vm6 = vcmp.lt.s32.totalorder %v964_v27, 16  ;;  %v2627_v34 = vunpack.c.l.bf16 %v2183_v24  ;;  %v2629_v35 = vunpack.c.h.bf16 %v2183_v24 }
  0x19   :  { %v879_v37 = vsel %vm856_vm0, %v876_v63, %v878_v16  ;;  %v885_v40 = vsel %vm856_vm0, %v882_v23, %v884_v28  ;;  %v966_v42 = vadd.s32 1, %v214_v31  ;;  %v102_v43 = vadd.s32 120, %v2531_v9 }
  0x1a   :  { %2329 = vrot.lane.b32.xlu0 %v2328_v29, %s2476_s8  ;;  %v1156_v44 = vsel %vm1028_vm6, %v881_v30, 0.0  ;;  %v883_v45 = vsel %vm856_vm0, %v880_v19, %v882_v23  ;;  %v886_v46 = vrot.slane %v2623_v32, 1  ;;  %v888_v47 = vrot.slane %v2627_v34, 1 }
  0x1b   :  { %2319 = vrot.lane.b32.xlu1 %v2318_v25, %s2476_s8  ;;  %vm1030_vm7 = vcmp.lt.s32.totalorder %v966_v42, 16  ;;  %v228_v48 = vand.u32 15, %v102_v43  ;;  %v2642_v49 = vunpack.c.l.bf16 %v2184_v36  ;;  %v104_v50 = vadd.s32 136, %v2531_v9 }
  0x1c   :  { %v1158_v51 = vsel %vm1030_vm7, %v885_v40, 0.0  ;;  %v890_v52 = vrot.slane %v2629_v35, 1  ;;  %v2333_v58 = vpack.i.bf16 %v1156_v44, %v879_v37  ;;  %v889_v62 = vsel %vm856_vm0, %v886_v46, %v888_v47  ;;  %v2188_v37 = vld [vmem:[%s3130_s0 + $0x68] sm:$0xff]  }
  0x1d   :  { %v968_v54 = vadd.s32 1, %v228_v48  ;;  %v242_v56 = vand.u32 15, %v104_v50  ;;  %v892_v57 = vrot.slane %v2642_v49, 1  ;;  %v2348_v61 = vpack.i.bf16 %v1158_v51, %v883_v45 }
  0x1e   :  { %2339 = vrot.lane.b32.xlu0 %v2338_v33, %s2475_s26  ;;  %v2652_v63 = vunpack.c.h.bf16 %v2184_v36  ;;  %v2655_v1 = vunpack.c.l.bf16 %v2185_v53  ;;  %v106_v2 = vadd.s32 152, %v2531_v9  ;;  %v2343_v12 = vpack.i.bf16 %v2623_v32, %v2610_v20 }
  0x1f   :  { %2324 = vrot.lane.b32.xlu1 %v2323_v21, %s2475_s26  ;;  %vm1032_vm8 = vcmp.lt.s32.totalorder %v968_v54, 16  ;;  %v970_v0 = vadd.s32 1, %v242_v56  ;;  %v893_v13 = vsel %vm856_vm0, %v890_v52, %v892_v57  ;;  %v2664_v15 = vunpack.c.h.bf16 %v2185_v53 }
  0x20   :  { %v2358_v16 = vpack.i.bf16 %v2629_v35, %v2627_v34  ;;  %v887_v17 = vsel %vm856_vm0, %v884_v28, %v886_v46  ;;  %v256_v18 = vand.u32 15, %v106_v2  ;;  %v1160_v19 = vsel %vm1032_vm8, %v889_v62, 0.0  ;;  %v2187_v28 = vld [vmem:[%s3130_s0 + $0x60] sm:$0xff]  }
  0x21   :  { %vm1034_vm9 = vcmp.lt.s32.totalorder %v970_v0, 16  ;;  %v891_v21 = vsel %vm856_vm0, %v888_v47, %v890_v52  ;;  %v2671_v22 = vunpack.c.l.bf16 %v2186_v8  ;;  %v108_v23 = vadd.s32 168, %v2531_v9 }
  0x22   :  { %2349 = vrot.lane.b32.xlu0 %v2348_v61, %s2476_s8  ;;  %v1162_v24 = vsel %vm1034_vm9, %v893_v13, 0.0  ;;  %v894_v25 = vrot.slane %v2652_v63, 1  ;;  %v896_v26 = vrot.slane %v2655_v1, 1  ;;  %v972_v27 = vadd.s32 1, %v256_v18  ;;  %v2190_v18 = vld [vmem:[%s3130_s0 + $0x78] sm:$0xff]  }
  0x23   :  { %2334 = vrot.lane.b32.xlu1 %v2333_v58, %s2476_s8  ;;  %v270_v29 = vand.u32 15, %v108_v23  ;;  %v898_v30 = vrot.slane %v2664_v15, 1  ;;  %v900_v31 = vrot.slane %v2671_v22, 1  ;;  %v2353_v33 = vpack.i.bf16 %v1160_v19, %v887_v17 }
  0x24   :  { %v110_v36 = vadd.s32 184, %v2531_v9  ;;  %v2368_v40 = vpack.i.bf16 %v1162_v24, %v891_v21  ;;  %v2687_v43 = vunpack.c.h.bf16 %v2186_v8  ;;  %v2689_v44 = vunpack.c.l.bf16 %v2187_v28 }
  0x25   :  { %v974_v42 = vadd.s32 1, %v270_v29  ;;  %v897_v45 = vsel %vm856_vm0, %v894_v25, %v896_v26  ;;  %vm1036_vm10 = vcmp.lt.s32.totalorder %v972_v27, 16  ;;  %v2693_v46 = vunpack.c.h.bf16 %v2187_v28 }
  0x26   :  { %2359 = vrot.lane.b32.xlu0 %v2358_v16, %s2475_s26  ;;  %v284_v47 = vand.u32 15, %v110_v36  ;;  %v901_v48 = vsel %vm856_vm0, %v898_v30, %v900_v31  ;;  %v2696_v50 = vunpack.c.l.bf16 %v2188_v37  ;;  %v112_v51 = vadd.s32 200, %v2531_v9 }
  0x27   :  { %2344 = vrot.lane.b32.xlu1 %v2343_v12, %s2475_s26  ;;  %vm1038_vm11 = vcmp.lt.s32.totalorder %v974_v42, 16  ;;  %v2363_v52 = vpack.i.bf16 %v2652_v63, %v2642_v49  ;;  %v2378_v53 = vpack.i.bf16 %v2664_v15, %v2655_v1  ;;  %v895_v54 = vsel %vm856_vm0, %v892_v57, %v894_v25  ;;  %v2189_v57 = vld [vmem:[%s3130_s0 + $0x70] sm:$0xff]  }
  0x28   :  { %v902_v56 = vrot.slane %v2687_v43, 1  ;;  %v904_v58 = vrot.slane %v2689_v44, 1  ;;  %v298_v61 = vand.u32 15, %v112_v51  ;;  %v1164_v62 = vsel %vm1036_vm10, %v897_v45, 0.0 }
  0x29   :  { %v899_v0 = vsel %vm856_vm0, %v896_v26, %v898_v30  ;;  %v1166_v2 = vsel %vm1038_vm11, %v901_v48, 0.0  ;;  %v976_v8 = vadd.s32 1, %v284_v47  ;;  %v906_v12 = vrot.slane %v2693_v46, 1 }
  0x2a   :  { %2369 = vrot.lane.b32.xlu0 %v2368_v40, %s2476_s8  ;;  %v908_v13 = vrot.slane %v2696_v50, 1  ;;  %v978_v16 = vadd.s32 1, %v298_v61  ;;  %v114_v17 = vadd.s32 216, %v2531_v9  ;;  %v2373_v19 = vpack.i.bf16 %v1164_v62, %v895_v54 }
  0x2b   :  { %2354 = vrot.lane.b32.xlu1 %v2353_v33, %s2476_s8  ;;  %v2388_v21 = vpack.i.bf16 %v1166_v2, %v899_v0  ;;  %v905_v23 = vsel %vm856_vm0, %v902_v56, %v904_v58  ;;  %vm1040_vm12 = vcmp.lt.s32.totalorder %v976_v8, 16  ;;  %v2721_v24 = vunpack.c.h.bf16 %v2188_v37 }
  0x2c   :  { %v2723_v25 = vunpack.c.l.bf16 %v2189_v57  ;;  %v116_v26 = vadd.s32 232, %v2531_v9  ;;  %v909_v27 = vsel %vm856_vm0, %v906_v12, %v908_v13  ;;  %vm1042_vm13 = vcmp.lt.s32.totalorder %v978_v16, 16 }
  0x2d   :  { %v2727_v28 = vunpack.c.h.bf16 %v2189_v57  ;;  %v2729_v29 = vunpack.c.l.bf16 %v2190_v18  ;;  %v537_v30 = vrot.slane %v2522_v5, 7  ;;  %v312_v33 = vand.u32 15, %v114_v17 }
  0x2e   :  { %2379 = vrot.lane.b32.xlu0 %v2378_v53, %s2475_s26  ;;  %v326_v36 = vand.u32 15, %v116_v26  ;;  %v2383_v37 = vpack.i.bf16 %v2687_v43, %v2671_v22  ;;  %v2398_v40 = vpack.i.bf16 %v2693_v46, %v2689_v44  ;;  %v903_v42 = vsel %vm856_vm0, %v900_v31, %v902_v56 }
  0x2f   :  { %2364 = vrot.lane.b32.xlu1 %v2363_v52, %s2475_s26  ;;  %v907_v45 = vsel %vm856_vm0, %v904_v58, %v906_v12  ;;  %v1168_v47 = vsel %vm1040_vm12, %v905_v23, 0.0  ;;  %v1170_v48 = vsel %vm1042_vm13, %v909_v27, 0.0  ;;  %v910_v5 = vrot.slane %v2721_v24, 1  ;;  %v2438_v12 = vld [vmem:[%s3131_s1] sm:$0x3f]  }
  0x30   :  { %v912_v51 = vrot.slane %v2723_v25, 1  ;;  %v914_v52 = vrot.slane %v2727_v28, 1  ;;  %v916_v53 = vrot.slane %v2729_v29, 1  ;;  %v982_v54 = vadd.s32 1, %v326_v36 }
  0x31   :  { %v539_v61 = vrot.slane %v2524_v6, 7  ;;  %v980_v62 = vadd.s32 1, %v312_v33  ;;  %v118_v31 = vadd.s32 248, %v2531_v9  ;;  %vm535_vm14 = vcmask 1040384  }
  0x32   :  { %2389 = vrot.lane.b32.xlu0 %v2388_v21, %s2476_s8  ;;  %v541_v56 = vrot.slane %v2526_v7, 7  ;;  %v2408_v58 = vpack.i.bf16 %v1170_v48, %v907_v45  ;;  %v2393_v2 = vpack.i.bf16 %v1168_v47, %v903_v42  ;;  %v2403_v8 = vpack.i.bf16 %v2721_v24, %v2696_v50 }
  0x33   :  { %2374 = vrot.lane.b32.xlu1 %v2373_v19, %s2476_s8  ;;  %v2750_v0 = vsel %vm535_vm14, %v537_v30, %v539_v61  ;;  %v917_v7 = vsel %vm856_vm0, %v914_v52, %v916_v53  ;;  %vm1046_vm15 = vcmp.lt.s32.totalorder %v982_v54, 16  ;;  %v2762_v16 = vunpack.c.h.bf16 %v2190_v18 }
  0x34   :  { %v2756_v6 = vsel %vm535_vm14, %v539_v61, %v541_v56  ;;  %v543_v57 = vrot.slane %v2533_v10, 7  ;;  %v913_v17 = vsel %vm856_vm0, %v910_v5, %v912_v51  ;;  %vm1044_vm1 = vcmp.lt.s32.totalorder %v980_v62, 16 }
  0x35   :  { %v340_v19 = vand.u32 15, %v118_v31  ;;  %v545_v21 = vrot.slane %v2535_v11, 7  ;;  %v2418_v23 = vpack.i.bf16 %v2727_v28, %v2723_v25  ;;  %v911_v26 = vsel %vm856_vm0, %v908_v13, %v910_v5 }
  0x36   :  { %2399 = vrot.lane.b32.xlu0 %v2398_v40, %s2475_s26  ;;  %v2772_v27 = vsel %vm535_vm14, %v541_v56, %v543_v57  ;;  %vm1546_vm2 = vcmask 1045504   ;;  %v915_v10 = vsel %vm856_vm0, %v912_v51, %v914_v52  ;;  %v1174_v18 = vsel %vm1046_vm15, %v917_v7, 0.0 }
  0x37   :  { %2384 = vrot.lane.b32.xlu1 %v2383_v37, %s2475_s26  ;;  %v2777_v33 = vsel %vm535_vm14, %v543_v57, %v545_v21  ;;  %2271 = vmatprep.subr.msk.bf16.mxu0 %vm1546_vm2, %v2438_v12  ;;  %v536_v11 = vrot.slane %v2520_v4, 7  ;;  %v1172_v36 = vsel %vm1044_vm1, %v913_v17, 0.0  ;;  %v918_v37 = vrot.slane %v2762_v16, 1 }
  0x38   :  { %v1548_v40 = vsel %vm1546_vm2, %v2438_v12, 0  ;;  %v547_v13 = vrot.slane %v2540_v14, 7  ;;  %v984_v42 = vadd.s32 1, %v340_v19  ;;  %v549_v47 = vrot.slane %v2565_v38, 7 }
  0x39   :  { %v2785_v45 = vsel %vm535_vm14, %v536_v11, %v537_v30  ;;  %2218 = vmatpush3.bf16.msra.mxu0 %v1548_v40  ;;  %v2428_v48 = vpack.i.bf16 %v1174_v18, %v915_v10  ;;  %v2413_v51 = vpack.i.bf16 %v1172_v36, %v911_v26  ;;  %v551_v52 = vrot.slane %v2567_v39, 7 }
  0x3a   :  { %2409 = vrot.lane.b32.xlu0 %v2408_v58, %s2476_s8  ;;  %v2790_v5 = vsel %vm535_vm14, %v545_v21, %v547_v13  ;;  %v2794_v14 = vsel %vm535_vm14, %v547_v13, %v549_v47  ;;  %v952_v30 = vsel %vm856_vm0, %v918_v37, 0.0  ;;  %v553_v54 = vrot.slane %v2570_v41, 7 }
  0x3b   :  { %2394 = vrot.lane.b32.xlu1 %v2393_v2, %s2476_s8  ;;  %vm1048_vm3 = vcmp.lt.s32.totalorder %v984_v42, 16  ;;  %v2800_v38 = vsel %vm535_vm14, %v549_v47, %v551_v52  ;;  %v555_v61 = vrot.slane %v2583_v55, 7  ;;  %v557_v62 = vrot.slane %v2588_v59, 7 }
  0x3c   :  { %v2806_v31 = vsel %vm535_vm14, %v551_v52, %v553_v54  ;;  %v2423_v39 = vpack.i.bf16 %v2762_v16, %v2729_v29  ;;  %v919_v55 = vsel %vm856_vm0, %v916_v53, %v918_v37  ;;  %v1176_v58 = vsel %vm1048_vm3, %v952_v30, 0.0 }
  0x3d   :  { %v2812_v41 = vsel %vm535_vm14, %v553_v54, %v555_v61  ;;  %v2815_v56 = vsel %vm535_vm14, %v555_v61, %v557_v62  ;;  %v559_v59 = vrot.slane %v2590_v60, 7  ;;  %v561_v2 = vrot.slane %v2602_v3, 7 }
  0x3e   :  { %2419 = vrot.lane.b32.xlu0 %v2418_v23, %s2475_s26  ;;  %v565_v57 = vrot.slane %v2623_v32, 7  ;;  %v2433_v17 = vpack.i.bf16 %v1176_v58, %v919_v55  ;;  %v567_v3 = vrot.slane %v2627_v34, 7  ;;  %v571_v21 = vrot.slane %v2642_v49, 7 }
  0x3f   :  { %2404 = vrot.lane.b32.xlu1 %v2403_v8, %s2475_s26  ;;  %v563_v8 = vrot.slane %v2610_v20, 7  ;;  %v2822_v12 = vsel %vm535_vm14, %v557_v62, %v559_v59  ;;  %v2825_v7 = vsel %vm535_vm14, %v559_v59, %v561_v2  ;;  %v569_v20 = vrot.slane %v2629_v35, 7 }
  0x40   :  { %v2838_v19 = vsel %vm535_vm14, %v565_v57, %v567_v3  ;;  %v573_v32 = vrot.slane %v2652_v63, 7  ;;  %v575_v34 = vrot.slane %v2655_v1, 7  ;;  %v577_v35 = vrot.slane %v2664_v15, 7 }
  0x41   :  { %v2830_v53 = vsel %vm535_vm14, %v561_v2, %v563_v8  ;;  %v2833_v60 = vsel %vm535_vm14, %v563_v8, %v565_v57  ;;  %v2844_v23 = vsel %vm535_vm14, %v567_v3, %v569_v20  ;;  %v2847_v26 = vsel %vm535_vm14, %v569_v20, %v571_v21 }
  0x42   :  { %2429 = vrot.lane.b32.xlu0 %v2428_v48, %s2476_s8  ;;  %v2850_v10 = vsel %vm535_vm14, %v571_v21, %v573_v32  ;;  %v579_v18 = vrot.slane %v2671_v22, 7  ;;  %v2856_v49 = vsel %vm535_vm14, %v573_v32, %v575_v34  ;;  %v2859_v63 = vsel %vm535_vm14, %v575_v34, %v577_v35 }
  0x43   :  { %2414 = vrot.lane.b32.xlu1 %v2413_v51, %s2476_s8  ;;  %v581_v36 = vrot.slane %v2687_v43, 7  ;;  %v583_v1 = vrot.slane %v2689_v44, 7  ;;  %v585_v15 = vrot.slane %v2693_v46, 7  ;;  %v587_v13 = vrot.slane %v2696_v50, 7 }
  0x44   :  { %v2863_v37 = vsel %vm535_vm14, %v577_v35, %v579_v18  ;;  %v589_v42 = vrot.slane %v2721_v24, 7  ;;  %v591_v44 = vrot.slane %v2723_v25, 7  ;;  %v593_v46 = vrot.slane %v2727_v28, 7 }
  0x45   :  { %v2866_v40 = vsel %vm535_vm14, %v579_v18, %v581_v36  ;;  %v2871_v22 = vsel %vm535_vm14, %v581_v36, %v583_v1  ;;  %v2876_v47 = vsel %vm535_vm14, %v583_v1, %v585_v15  ;;  %v2879_v43 = vsel %vm535_vm14, %v585_v15, %v587_v13 }
  0x46   :  { %v2882_v48 = vsel %vm535_vm14, %v587_v13, %v589_v42  ;;  %v595_v51 = vrot.slane %v2729_v29, 7  ;;  %v2888_v52 = vsel %vm535_vm14, %v589_v42, %v591_v44  ;;  %v2891_v50 = vsel %vm535_vm14, %v591_v44, %v593_v46 }
  0x47   :  { %2424 = vrot.lane.b32.xlu1 %v2423_v39, %s2475_s26  ;;  %v597_v24 = vrot.slane %v2762_v16, 7  ;;  %v89_v25 = vadd.s32 16, %v2531_v9  ;;  %v91_v28 = vadd.s32 32, %v2531_v9  ;;  %v123_v29 = vand.u32 15, %v2531_v9 }
  0x48   :  { %v2895_v30 = vsel %vm535_vm14, %v593_v46, %v595_v51  ;;  %v95_v55 = vadd.s32 64, %v2531_v9  ;;  %v631_v2 = vsel %vm535_vm14, 0.0, %v536_v11  ;;  %v93_v8 = vadd.s32 48, %v2531_v9 }
  0x49   :  { %v2898_v54 = vsel %vm535_vm14, %v595_v51, %v597_v24  ;;  %v137_v61 = vand.u32 15, %v89_v25  ;;  %v151_v62 = vand.u32 15, %v91_v28  ;;  %v632_v39 = vadd.s32 4294967295, %v123_v29 }
  0x4a   :  { %v179_v57 = vand.u32 15, %v95_v55  ;;  %vm1401_vm4 = vcmask 31744   ;;  %v165_v32 = vand.u32 15, %v93_v8  ;;  %v97_v18 = vadd.s32 80, %v2531_v9 }
  0x4b   :  { %2434 = vrot.lane.b32.xlu1 %v2433_v17, %s2476_s8  ;;  %v634_v59 = vadd.s32 4294967295, %v137_v61  ;;  %v636_v16 = vadd.s32 4294967295, %v151_v62  ;;  %vm664_vm0 = vcmp.ge.s32.totalorder %v632_v39, 0  ;;  %v99_v4 = vadd.s32 96, %v2531_v9 }
  0x4c   :  { %v824_v21 = vsel %vm664_vm0, %v631_v2, 0.0  ;;  %v640_v35 = vadd.s32 4294967295, %v179_v57  ;;  %vm1434_vm7 = vcmask 64512   ;;  %vm1497_vm8 = vcmask 97280  }
  0x4d   :  { %vm666_vm5 = vcmp.ge.s32.totalorder %v634_v59, 0  ;;  %vm668_vm6 = vcmp.ge.s32.totalorder %v636_v16, 0  ;;  %v638_v28 = vadd.s32 4294967295, %v165_v32  ;;  %v207_v29 = vand.u32 15, %v99_v4 }
  0x4e   :  { %v826_v11 = vsel %vm666_vm5, %v2750_v0, 0.0  ;;  %v828_v36 = vsel %vm668_vm6, %v2772_v27, 0.0  ;;  %vm672_vm9 = vcmp.ge.s32.totalorder %v640_v35, 0  ;;  %v193_v27 = vand.u32 15, %v97_v18 }
  0x4f   :  { %vm670_vm10 = vcmp.ge.s32.totalorder %v638_v28, 0 }
  0x78   :  { %v2280_v58 = vpop.permute.xlu0 %2279 }
  0x79   :  { %v2281_v17 = vunpack.i.l.bf16 %v2280_v58  ;;  %v2282_v20 = vunpack.i.h.bf16 %v2280_v58 }
  0x7b   :  { %v1402_v15 = vsel %vm1401_vm4, %v824_v21, %v2281_v17  ;;  %v1403_v51 = vsel %vm1401_vm4, %v2785_v45, %v2282_v20  ;;  %v103_v17 = vadd.s32 128, %v2531_v9  ;;  %v832_v20 = vsel %vm672_vm9, %v2800_v38, 0.0 }
  0x7c   :  { %v2285_v3 = vpop.permute.xlu0 %2284  ;;  %v644_v21 = vadd.s32 4294967295, %v207_v29  ;;  %v830_v38 = vsel %vm670_vm10, %v2790_v5, 0.0  ;;  %vm1947_vm9 = vcmask 1043459   ;;  %vm1949_vm10 = vcmask 1044484  }
  0x7d   :  { %v2287_v34 = vunpack.i.h.bf16 %v2285_v3  ;;  %v2286_v13 = vunpack.i.l.bf16 %v2285_v3 }
  0x7e   :  { %vm676_vm11 = vcmp.ge.s32.totalorder %v644_v21, 0 }
  0x7f   :  { %v1405_v0 = vsel %vm1401_vm4, %v2756_v6, %v2287_v34  ;;  %v1404_v58 = vsel %vm1401_vm4, %v826_v11, %v2286_v13  ;;  %v642_v11 = vadd.s32 4294967295, %v193_v27 }
  0x80   :  { %v2290_v1 = vpop.permute.xlu0 %2289 }
  0x81   :  { %v2295_v42 = vpop.permute.xlu1 %2294  ;;  %v2292_v44 = vunpack.i.h.bf16 %v2290_v1  ;;  %v2291_v46 = vunpack.i.l.bf16 %v2290_v1  ;;  %vm674_vm12 = vcmp.ge.s32.totalorder %v642_v11, 0 }
  0x82   :  { %v2297_v24 = vunpack.i.h.bf16 %v2295_v42  ;;  %v2296_v25 = vunpack.i.l.bf16 %v2295_v42  ;;  %v101_v42 = vadd.s32 112, %v2531_v9 }
  0x83   :  { %v1407_v61 = vsel %vm1401_vm4, %v2777_v33, %v2292_v44  ;;  %v1406_v62 = vsel %vm1401_vm4, %v828_v36, %v2291_v46  ;;  %v235_v44 = vand.u32 15, %v103_v17 }
  0x84   :  { %v1435_v39 = vsel %vm1434_vm7, %v1402_v15, %v2296_v25  ;;  %v1436_v55 = vsel %vm1434_vm7, %v1403_v51, %v2297_v24  ;;  %v2310_v45 = vpop.permute.xlu0 %2309 }
  0x85   :  { %v2300_v59 = vpop.permute.xlu1 %2299  ;;  %v1467_v16 = vpack.c.bf16 %v1436_v55, %v1435_v39  ;;  %v2312_v2 = vunpack.i.h.bf16 %v2310_v45  ;;  %v2311_v8 = vunpack.i.l.bf16 %v2310_v45  ;;  %v836_v55 = vsel %vm676_vm11, %v2822_v12, 0.0 }
  0x86   :  { %v2302_v6 = vunpack.i.h.bf16 %v2300_v59  ;;  %v2301_v57 = vunpack.i.l.bf16 %v2300_v59  ;;  %v648_v45 = vadd.s32 4294967295, %v235_v44  ;;  %vm1951_vm11 = vcmask 1045509  }
  0x87   :  { %2219 = vmatprep.mubr.msk.bf16.mxu0 %vm1497_vm8, %v1467_v16  ;;  %v1439_v33 = vsel %vm1434_vm7, %v1406_v62, %v2311_v8  ;;  %v1440_v3 = vsel %vm1434_vm7, %v1407_v61, %v2312_v2  ;;  %v221_v61 = vand.u32 15, %v101_v42 }
  0x88   :  { %v1438_v32 = vsel %vm1434_vm7, %v1405_v0, %v2302_v6  ;;  %v1437_v34 = vsel %vm1434_vm7, %v1404_v58, %v2301_v57  ;;  %v1469_v18 = vpack.c.bf16 %v1440_v3, %v1439_v33  ;;  %v2315_v4 = vpop.permute.xlu0 %2314  ;;  %v105_v6 = vadd.s32 144, %v2531_v9 }
  0x89   :  { %v1468_v36 = vpack.c.bf16 %v1438_v32, %v1437_v34  ;;  %v2305_v1 = vpop.permute.xlu1 %2304  ;;  %v2317_v15 = vunpack.i.h.bf16 %v2315_v4  ;;  %v2316_v13 = vunpack.i.l.bf16 %v2315_v4  ;;  %v646_v3 = vadd.s32 4294967295, %v221_v61 }
  0x8a   :  { %v2307_v46 = vunpack.i.h.bf16 %v2305_v1  ;;  %v2306_v51 = vunpack.i.l.bf16 %v2305_v1  ;;  %vm680_vm13 = vcmp.ge.s32.totalorder %v648_v45, 0  ;;  %v834_v32 = vsel %vm674_vm12, %v2812_v41, 0.0 }
  0x8b   :  { %2220 = vmatmul.mubr.msk.bf16.vlgmr.msra.gmra.mrb[0].mxu0 %vm1497_vm8, %v1468_v36  ;;  %v1411_v35 = vsel %vm1401_vm4, %v2806_v31, %v2317_v15  ;;  %v1410_v24 = vsel %vm1401_vm4, %v832_v20, %v2316_v13  ;;  %v249_v36 = vand.u32 15, %v105_v6  ;;  %vm678_vm14 = vcmp.ge.s32.totalorder %v646_v3, 0 }
  0x8c   :  { %2223 = vmatprep.mubr.msk.bf16.mxu0 %vm1497_vm8, %v1469_v18  ;;  %v2330_v25 = vpop.permute.xlu0 %2329  ;;  %v1409_v5 = vsel %vm1401_vm4, %v2794_v14, %v2307_v46  ;;  %v1408_v31 = vsel %vm1401_vm4, %v830_v38, %v2306_v51  ;;  %v107_v14 = vadd.s32 160, %v2531_v9  ;;  %v840_v51 = vsel %vm680_vm13, %v2838_v19, 0.0 }
  0x8d   :  { %v2320_v0 = vpop.permute.xlu1 %2319  ;;  %v2332_v27 = vunpack.i.h.bf16 %v2330_v25  ;;  %v2331_v29 = vunpack.i.l.bf16 %v2330_v25  ;;  %vm1953_vm12 = vcmask 1046534   ;;  %vm1955_vm13 = vcmask 1047559  }
  0x8e   :  { %v2322_v62 = vunpack.i.h.bf16 %v2320_v0  ;;  %v2321_v39 = vunpack.i.l.bf16 %v2320_v0  ;;  %v263_v42 = vand.u32 15, %v107_v14 }
  0x8f   :  { %v1443_v28 = vsel %vm1434_vm7, %v1410_v24, %v2331_v29  ;;  %v1444_v58 = vsel %vm1434_vm7, %v1411_v35, %v2332_v27  ;;  %v650_v27 = vadd.s32 4294967295, %v249_v36 }
  0x90   :  { %v1441_v59 = vsel %vm1434_vm7, %v1408_v31, %v2321_v39  ;;  %v1442_v16 = vsel %vm1434_vm7, %v1409_v5, %v2322_v62  ;;  %v1471_v2 = vpack.c.bf16 %v1444_v58, %v1443_v28  ;;  %v2340_v8 = vpop.permute.xlu0 %2339  ;;  %v652_v39 = vadd.s32 4294967295, %v263_v42 }
  0x91   :  { %v1470_v57 = vpack.c.bf16 %v1442_v16, %v1441_v59  ;;  %v2325_v12 = vpop.permute.xlu1 %2324  ;;  %v2342_v17 = vunpack.i.h.bf16 %v2340_v8  ;;  %v2341_v33 = vunpack.i.l.bf16 %v2340_v8  ;;  %v838_v31 = vsel %vm678_vm14, %v2830_v53, 0.0 }
  0x92   :  { %v2327_v20 = vunpack.i.h.bf16 %v2325_v12  ;;  %v2326_v21 = vunpack.i.l.bf16 %v2325_v12  ;;  %vm682_vm15 = vcmp.ge.s32.totalorder %v650_v27, 0  ;;  %vm684_vm1 = vcmp.ge.s32.totalorder %v652_v39, 0 }
  0x93   :  { %2224 = vmatmul.mubr.msk.bf16.gmra.mrb[4].mxu0 %vm1497_vm8, %v1470_v57  ;;  %v1415_v34 = vsel %vm1401_vm4, %v2825_v7, %v2342_v17  ;;  %v1414_v18 = vsel %vm1401_vm4, %v836_v55, %v2341_v33  ;;  %v111_v55 = vadd.s32 192, %v2531_v9 }
  0x94   :  { %2227 = vmatprep.mubr.msk.bf16.mxu0 %vm1497_vm8, %v1471_v2  ;;  %v2350_v4 = vpop.permute.xlu0 %2349  ;;  %v1413_v41 = vsel %vm1401_vm4, %v2815_v56, %v2327_v20  ;;  %v1412_v7 = vsel %vm1401_vm4, %v834_v32, %v2326_v21  ;;  %v109_v56 = vadd.s32 176, %v2531_v9  ;;  %v844_v32 = vsel %vm684_vm1, %v2856_v49, 0.0 }
  0x95   :  { %v2335_v1 = vpop.permute.xlu1 %2334  ;;  %v2352_v15 = vunpack.i.h.bf16 %v2350_v4  ;;  %v2351_v13 = vunpack.i.l.bf16 %v2350_v4  ;;  %v291_v17 = vand.u32 15, %v111_v55 }
  0x96   :  { %v2337_v44 = vunpack.i.h.bf16 %v2335_v1  ;;  %v2336_v46 = vunpack.i.l.bf16 %v2335_v1  ;;  %v277_v12 = vand.u32 15, %v109_v56 }
  0x97   :  { %v1447_v11 = vsel %vm1434_vm7, %v1414_v18, %v2351_v13  ;;  %v1448_v38 = vsel %vm1434_vm7, %v1415_v34, %v2352_v15  ;;  %v656_v15 = vadd.s32 4294967295, %v291_v17  ;;  %v115_v13 = vadd.s32 224, %v2531_v9 }
  0x98   :  { %v1445_v35 = vsel %vm1434_vm7, %v1412_v7, %v2336_v46  ;;  %v1446_v24 = vsel %vm1434_vm7, %v1413_v41, %v2337_v44  ;;  %v1473_v25 = vpack.c.bf16 %v1448_v38, %v1447_v11  ;;  %v2360_v0 = vpop.permute.xlu0 %2359  ;;  %v842_v46 = vsel %vm682_vm15, %v2847_v26, 0.0 }
  0x99   :  { %v1472_v29 = vpack.c.bf16 %v1446_v24, %v1445_v35  ;;  %v2345_v61 = vpop.permute.xlu1 %2344  ;;  %v2362_v62 = vunpack.i.h.bf16 %v2360_v0  ;;  %v2361_v19 = vunpack.i.l.bf16 %v2360_v0  ;;  %v654_v7 = vadd.s32 4294967295, %v277_v12 }
  0x9a   :  { %v2347_v45 = vunpack.i.h.bf16 %v2345_v61  ;;  %v2346_v5 = vunpack.i.l.bf16 %v2345_v61  ;;  %vm688_vm2 = vcmp.ge.s32.totalorder %v656_v15, 0 }
  0x9b   :  { %2228 = vmatmul.mubr.msk.bf16.gmra.mrb[8].mxu0 %vm1497_vm8, %v1472_v29  ;;  %v1419_v28 = vsel %vm1401_vm4, %v2844_v23, %v2362_v62  ;;  %v1418_v58 = vsel %vm1401_vm4, %v840_v51, %v2361_v19  ;;  %v319_v29 = vand.u32 15, %v115_v13  ;;  %vm686_vm3 = vcmp.ge.s32.totalorder %v654_v7, 0 }
  0x9c   :  { %2231 = vmatprep.mubr.msk.bf16.mxu0 %vm1497_vm8, %v1473_v25  ;;  %v2370_v59 = vpop.permute.xlu0 %2369  ;;  %v1417_v53 = vsel %vm1401_vm4, %v2833_v60, %v2347_v45  ;;  %v1416_v33 = vsel %vm1401_vm4, %v838_v31, %v2346_v5  ;;  %v113_v60 = vadd.s32 208, %v2531_v9  ;;  %v848_v5 = vsel %vm688_vm2, %v2871_v22, 0.0 }
  0x9d   :  { %v2355_v16 = vpop.permute.xlu1 %2354  ;;  %v2372_v2 = vunpack.i.h.bf16 %v2370_v59  ;;  %v2371_v8 = vunpack.i.l.bf16 %v2370_v59  ;;  %v117_v22 = vadd.s32 240, %v2531_v9 }
  0x9e   :  { %v2357_v6 = vunpack.i.h.bf16 %v2355_v16  ;;  %v2356_v57 = vunpack.i.l.bf16 %v2355_v16  ;;  %v305_v24 = vand.u32 15, %v113_v60 }
  0x9f   :  { %v1451_v23 = vsel %vm1434_vm7, %v1418_v58, %v2371_v8  ;;  %v1452_v14 = vsel %vm1434_vm7, %v1419_v28, %v2372_v2  ;;  %v660_v58 = vadd.s32 4294967295, %v319_v29  ;;  %v846_v2 = vsel %vm686_vm3, %v2863_v37, 0.0 }
  0xa0   :  { %v1449_v3 = vsel %vm1434_vm7, %v1416_v33, %v2356_v57  ;;  %v1450_v20 = vsel %vm1434_vm7, %v1417_v53, %v2357_v6  ;;  %v1475_v21 = vpack.c.bf16 %v1452_v14, %v1451_v23  ;;  %v2380_v34 = vpop.permute.xlu0 %2379 }
  0xa1   :  { %v1474_v18 = vpack.c.bf16 %v1450_v20, %v1449_v3  ;;  %v2365_v4 = vpop.permute.xlu1 %2364  ;;  %v2382_v36 = vunpack.i.h.bf16 %v2380_v34  ;;  %v2381_v1 = vunpack.i.l.bf16 %v2380_v34  ;;  %vm692_vm5 = vcmp.ge.s32.totalorder %v660_v58, 0  ;;  %v2443_v58 = vld [vmem:[%s3133_s3 + $0x20] sm:$0xff]  }
  0xa2   :  { %v2367_v42 = vunpack.i.h.bf16 %v2365_v4  ;;  %v2366_v44 = vunpack.i.l.bf16 %v2365_v4  ;;  %v333_v34 = vand.u32 15, %v117_v22 }
  0xa3   :  { %2232 = vmatmul.mubr.msk.bf16.gmra.mrb[12].mxu0 %vm1497_vm8, %v1474_v18  ;;  %v1423_v49 = vsel %vm1401_vm4, %v2859_v63, %v2382_v36  ;;  %v1422_v51 = vsel %vm1401_vm4, %v844_v32, %v2381_v1  ;;  %v852_v36 = vsel %vm692_vm5, %v2888_v52, 0.0 }
  0xa4   :  { %2235 = vmatprep.mubr.msk.bf16.mxu0 %vm1497_vm8, %v1475_v21  ;;  %v2390_v41 = vpop.permute.xlu0 %2389  ;;  %v1421_v26 = vsel %vm1401_vm4, %v2850_v10, %v2367_v42  ;;  %v1420_v27 = vsel %vm1401_vm4, %v842_v46, %v2366_v44  ;;  %v658_v10 = vadd.s32 4294967295, %v305_v24 }
  0xa5   :  { %v2375_v11 = vpop.permute.xlu1 %2374  ;;  %v2392_v38 = vunpack.i.h.bf16 %v2390_v41  ;;  %v2391_v35 = vunpack.i.l.bf16 %v2390_v41  ;;  %v662_v41 = vadd.s32 4294967295, %v333_v34 }
  0xa6   :  { %v2377_v25 = vunpack.i.h.bf16 %v2375_v11  ;;  %v2376_v0 = vunpack.i.l.bf16 %v2375_v11  ;;  %vm690_vm0 = vcmp.ge.s32.totalorder %v658_v10, 0  ;;  %v2442_v10 = vld [vmem:[%s3133_s3 + $0x18] sm:$0xff]  }
  0xa7   :  { %v1455_v63 = vsel %vm1434_vm7, %v1422_v51, %v2391_v35  ;;  %v1456_v61 = vsel %vm1434_vm7, %v1423_v49, %v2392_v38  ;;  %v850_v13 = vsel %vm690_vm0, %v2879_v43, 0.0  ;;  %vm694_vm6 = vcmp.ge.s32.totalorder %v662_v41, 0 }
  0xa8   :  { %v1453_v62 = vsel %vm1434_vm7, %v1420_v27, %v2376_v0  ;;  %v1454_v19 = vsel %vm1434_vm7, %v1421_v26, %v2377_v25  ;;  %v1477_v39 = vpack.c.bf16 %v1456_v61, %v1455_v63  ;;  %v2400_v56 = vpop.permute.xlu0 %2399 }
  0xa9   :  { %v1476_v55 = vpack.c.bf16 %v1454_v19, %v1453_v62  ;;  %v2385_v45 = vpop.permute.xlu1 %2384  ;;  %v2402_v31 = vunpack.i.h.bf16 %v2400_v56  ;;  %v2401_v28 = vunpack.i.l.bf16 %v2400_v56 }
  0xaa   :  { %v2387_v59 = vunpack.i.h.bf16 %v2385_v45  ;;  %v2386_v16 = vunpack.i.l.bf16 %v2385_v45 }
  0xab   :  { %2236 = vmatmul.mubr.msk.bf16.gmra.mrb[16].mxu0 %vm1497_vm8, %v1476_v55  ;;  %v1427_v8 = vsel %vm1401_vm4, %v2876_v47, %v2402_v31  ;;  %v1426_v6 = vsel %vm1401_vm4, %v848_v5, %v2401_v28  ;;  %v2477_v31 = vmov 0.0   ;;  %v2441_v28 = vld [vmem:[%s3133_s3 + $0x10] sm:$0xff]  }
  0xac   :  { %2239 = vmatprep.mubr.msk.bf16.mxu0 %vm1497_vm8, %v1477_v39  ;;  %v2410_v57 = vpop.permute.xlu0 %2409  ;;  %v1425_v37 = vsel %vm1401_vm4, %v2866_v40, %v2387_v59  ;;  %v1424_v14 = vsel %vm1401_vm4, %v846_v2, %v2386_v16  ;;  %2251 = vmatprep.subr.bf16.mxu1 %v2477_v31  ;;  %v2444_v59 = vld [vmem:[%s3133_s3 + $0x28] sm:$0xff]   ;;  %v2445_v16 = vld [vmem:[%s3133_s3 + $0x30] sm:$0xff]   ;;  %v2446_v2 = vld [vmem:[%s3133_s3 + $0x38] sm:$0xff]  }
  0xad   :  { %v2395_v12 = vpop.permute.xlu1 %2394  ;;  %v2412_v17 = vunpack.i.h.bf16 %v2410_v57  ;;  %v2411_v53 = vunpack.i.l.bf16 %v2410_v57 }
  0xae   :  { %v2397_v33 = vunpack.i.h.bf16 %v2395_v12  ;;  %v2396_v23 = vunpack.i.l.bf16 %v2395_v12 }
  0xaf   :  { %v1459_v47 = vsel %vm1434_vm7, %v1426_v6, %v2411_v53  ;;  %v1460_v3 = vsel %vm1434_vm7, %v1427_v8, %v2412_v17  ;;  %v3063_v8 = vld [vmem:[%s3132_s2] ss:$0 sm:$0xff] }
  0xb0   :  { %v1457_v20 = vsel %vm1434_vm7, %v1424_v14, %v2396_v23  ;;  %v1458_v9 = vsel %vm1434_vm7, %v1425_v37, %v2397_v33  ;;  %v1479_v21 = vpack.c.bf16 %v1460_v3, %v1459_v47  ;;  %v2420_v32 = vpop.permute.xlu0 %2419 }
  0xb1   :  { %v1478_v18 = vpack.c.bf16 %v1458_v9, %v1457_v20  ;;  %v2405_v4 = vpop.permute.xlu1 %2404  ;;  %v2422_v1 = vunpack.i.h.bf16 %v2420_v32  ;;  %v2421_v60 = vunpack.i.l.bf16 %v2420_v32 }
  0xb2   :  { %v2407_v40 = vunpack.i.h.bf16 %v2405_v4  ;;  %v2406_v15 = vunpack.i.l.bf16 %v2405_v4 }
  0xb3   :  { %2240 = vmatmul.mubr.msk.bf16.gmra.mrb[20].mxu0 %vm1497_vm8, %v1478_v18  ;;  %v1431_v42 = vsel %vm1401_vm4, %v2891_v50, %v2422_v1  ;;  %v1430_v44 = vsel %vm1401_vm4, %v852_v36, %v2421_v60 }
  0xb4   :  { %2243 = vmatprep.mubr.msk.bf16.mxu0 %vm1497_vm8, %v1479_v21  ;;  %v2430_v46 = vpop.permute.xlu0 %2429  ;;  %v1429_v38 = vsel %vm1401_vm4, %v2882_v48, %v2407_v40  ;;  %v1428_v35 = vsel %vm1401_vm4, %v850_v13, %v2406_v15  ;;  %v854_v48 = vsel %vm694_vm6, %v2895_v30, 0.0  ;;  %v2439_v30 = vld [vmem:[%s3133_s3] sm:$0xff]  }
  0xb5   :  { %v2415_v49 = vpop.permute.xlu1 %2414  ;;  %v2432_v51 = vunpack.i.h.bf16 %v2430_v46  ;;  %v2431_v52 = vunpack.i.l.bf16 %v2430_v46  ;;  %2252 = vmatpush3.bf16.msra.mxu1 %v2439_v30 }
  0xb6   :  { %v2417_v7 = vunpack.i.h.bf16 %v2415_v49  ;;  %v2416_v11 = vunpack.i.l.bf16 %v2415_v49  ;;  %2253 = vmatprep.subr.bf16.mxu1 %v2477_v31 }
  0xb7   :  { %v1463_v43 = vsel %vm1434_vm7, %v1430_v44, %v2431_v52  ;;  %v1464_v50 = vsel %vm1434_vm7, %v1431_v42, %v2432_v51 }
  0xb8   :  { %v1461_v24 = vsel %vm1434_vm7, %v1428_v35, %v2416_v11  ;;  %v1462_v25 = vsel %vm1434_vm7, %v1429_v38, %v2417_v7  ;;  %v1481_v0 = vpack.c.bf16 %v1464_v50, %v1463_v43 }
  0xb9   :  { %v1480_v29 = vpack.c.bf16 %v1462_v25, %v1461_v24  ;;  %v2425_v26 = vpop.permute.xlu1 %2424 }
  0xba   :  { %v2427_v27 = vunpack.i.h.bf16 %v2425_v26  ;;  %v2426_v63 = vunpack.i.l.bf16 %v2425_v26 }
  0xbb   :  { %2244 = vmatmul.mubr.msk.bf16.gmra.mrb[24].mxu0 %vm1497_vm8, %v1480_v29 }
  0xbc   :  { %2247 = vmatprep.mubr.msk.bf16.mxu0 %vm1497_vm8, %v1481_v0  ;;  %v1433_v39 = vsel %vm1401_vm4, %v2898_v54, %v2427_v27  ;;  %v1432_v56 = vsel %vm1401_vm4, %v854_v48, %v2426_v63  ;;  %v2440_v54 = vld [vmem:[%s3133_s3 + $0x8] sm:$0xff]   ;;  %vm2478_vm4 = vmmov 0  }
  0xbd   :  { %v2435_v61 = vpop.permute.xlu1 %2434  ;;  %2254 = vmatpush3.bf16.msra.mxu1 %v2440_v54  ;;  %2267 = vmatprep.mubr.msk.bf16.mxu1 %vm2478_vm4, %v2477_v31 }
  0xbe   :  { %v2437_v62 = vunpack.i.h.bf16 %v2435_v61  ;;  %v2436_v19 = vunpack.i.l.bf16 %v2435_v61  ;;  %2255 = vmatprep.subr.bf16.mxu1 %v2477_v31 }
  0xc0   :  { %v1465_v55 = vsel %vm1434_vm7, %v1432_v56, %v2436_v19  ;;  %v1466_v45 = vsel %vm1434_vm7, %v1433_v39, %v2437_v62  ;;  %vm1943_vm7 = vcmask 1041409  }
  0xc1   :  { %v1482_v5 = vpack.c.bf16 %v1466_v45, %v1465_v55  ;;  %2256 = vmatpush3.bf16.msra.mxu1 %v2441_v28 }
  0xc2   :  { %2257 = vmatprep.subr.bf16.mxu1 %v2477_v31 }
  0xc3   :  { %2248 = vmatmul.mubr.msk.bf16.gmra.mrb[28].mxu0 %vm1497_vm8, %v1482_v5  ;;  %vm1945_vm8 = vcmask 1042434  }
  0xc5   :  { %2258 = vmatpush3.bf16.msra.mxu1 %v2442_v10 }
  0xc6   :  { %2259 = vmatprep.subr.bf16.mxu1 %v2477_v31 }
  0xc9   :  { %2260 = vmatpush3.bf16.msra.mxu1 %v2443_v58 }
  0xca   :  { %2261 = vmatprep.subr.bf16.mxu1 %v2477_v31 }
  0xcd   :  { %2262 = vmatpush3.bf16.msra.mxu1 %v2444_v59 }
  0xce   :  { %2263 = vmatprep.subr.bf16.mxu1 %v2477_v31 }
  0xd1   :  { %2264 = vmatpush3.bf16.msra.mxu1 %v2445_v16 }
  0xd2   :  { %2265 = vmatprep.subr.bf16.mxu1 %v2477_v31 }
  0xd5   :  { %2266 = vmatpush3.bf16.msra.mxu1 %v2446_v2 }
 0x15e   :  { %v2221_v6 = vpop.f32.mrb[0].mxu0 }
 0x15f   :  { %v1593_v57 = vadd.f32 %v2221_v6, %v3063_v8  ;;  %v1584_v22 = vpop.f32.mrb[1].mxu0 }
 0x160   :  { %v1585_v12 = vadd.f32 %v3063_v8, %v1584_v22  ;;  %v2222_v17 = vpop.f32.mrb[2].mxu0 }
 0x161   :  { %v1596_v53 = vadd.f32 %v2222_v17, %v3063_v8  ;;  %v1587_v33 = vpop.f32.mrb[3].mxu0  ;;  %v1713_v37 = vmax.f32 %v1593_v57, 0.0 }
 0x162   :  { %v1588_v23 = vadd.f32 %v3063_v8, %v1587_v33  ;;  %v1711_v47 = vmax.f32 %v1585_v12, 0.0 }
 0x163   :  { %v1714_v14 = vmax.f32 %v1596_v53, 0.0 }
 0x164   :  { %v1712_v3 = vmax.f32 %v1588_v23, 0.0 }
 0x165   :  { %v1750_v20 = vadd.f32 %v1714_v14, %v1713_v37 }
 0x166   :  { %v1743_v9 = vadd.f32 %v1712_v3, %v1711_v47  ;;  %v2225_v21 = vpop.f32.mrb[4].mxu0 }
 0x167   :  { %v1751_v32 = vrot.slane %v1750_v20, 4  ;;  %v1609_v34 = vadd.f32 %v2225_v21, %v3063_v8  ;;  %v1600_v18 = vpop.f32.mrb[5].mxu0 }
 0x168   :  { %v1744_v4 = vrot.slane %v1743_v9, 4  ;;  %v1601_v36 = vadd.f32 %v3063_v8, %v1600_v18  ;;  %v2226_v1 = vpop.f32.mrb[6].mxu0 }
 0x169   :  { %v1752_v60 = vadd.f32 %v1751_v32, %v1750_v20  ;;  %v1612_v40 = vadd.f32 %v2226_v1, %v3063_v8  ;;  %v1603_v15 = vpop.f32.mrb[7].mxu0  ;;  %v1717_v46 = vmax.f32 %v1609_v34, 0.0 }
 0x16a   :  { %v1745_v13 = vadd.f32 %v1744_v4, %v1743_v9  ;;  %v1604_v42 = vadd.f32 %v3063_v8, %v1603_v15  ;;  %v1715_v52 = vmax.f32 %v1601_v36, 0.0 }
 0x16b   :  { %v1753_v44 = vrot.slane %v1752_v60, 2  ;;  %v1718_v49 = vmax.f32 %v1612_v40, 0.0 }
 0x16c   :  { %v1746_v51 = vrot.slane %v1745_v13, 2  ;;  %v1716_v41 = vmax.f32 %v1604_v42, 0.0 }
 0x16d   :  { %v1754_v7 = vadd.f32 %v1753_v44, %v1752_v60  ;;  %v1764_v11 = vadd.f32 %v1718_v49, %v1717_v46 }
 0x16e   :  { %v1747_v38 = vadd.f32 %v1746_v51, %v1745_v13  ;;  %v1757_v35 = vadd.f32 %v1716_v41, %v1715_v52  ;;  %v2229_v43 = vpop.f32.mrb[8].mxu0 }
 0x16f   :  { %v1755_v50 = vrot.slane %v1754_v7, 1  ;;  %v1765_v24 = vrot.slane %v1764_v11, 4  ;;  %v1625_v25 = vadd.f32 %v2229_v43, %v3063_v8  ;;  %v1616_v0 = vpop.f32.mrb[9].mxu0 }
 0x170   :  { %v1748_v29 = vrot.slane %v1747_v38, 1  ;;  %v1758_v26 = vrot.slane %v1757_v35, 4  ;;  %v1617_v27 = vadd.f32 %v3063_v8, %v1616_v0  ;;  %v2230_v63 = vpop.f32.mrb[10].mxu0 }
 0x171   :  { %v1756_v48 = vadd.f32 %v1755_v50, %v1754_v7  ;;  %v1766_v61 = vadd.f32 %v1765_v24, %v1764_v11  ;;  %v1628_v62 = vadd.f32 %v2230_v63, %v3063_v8  ;;  %v1619_v19 = vpop.f32.mrb[11].mxu0  ;;  %v1721_v30 = vmax.f32 %v1625_v25, 0.0 }
 0x172   :  { %v1749_v39 = vadd.f32 %v1748_v29, %v1747_v38  ;;  %v1759_v56 = vadd.f32 %v1758_v26, %v1757_v35  ;;  %v1620_v55 = vadd.f32 %v3063_v8, %v1619_v19  ;;  %v1719_v10 = vmax.f32 %v1617_v27, 0.0 }
 0x173   :  { %v1857_v45 = vmul.f32 0.0625, %v1756_v48  ;;  %v1767_v5 = vrot.slane %v1766_v61, 2  ;;  %v1722_v31 = vmax.f32 %v1628_v62, 0.0 }
 0x174   :  { %v1856_v54 = vmul.f32 0.0625, %v1749_v39  ;;  %v1760_v28 = vrot.slane %v1759_v56, 2  ;;  %v1720_v58 = vmax.f32 %v1620_v55, 0.0 }
 0x175   :  { %v1873_v59 = vpack.c.bf16 %v1857_v45, %v1857_v45  ;;  %v1768_v16 = vadd.f32 %v1767_v5, %v1766_v61  ;;  %v1778_v2 = vadd.f32 %v1722_v31, %v1721_v30 }
 0x176   :  { %v1872_v6 = vpack.c.bf16 %v1856_v54, %v1856_v54  ;;  %v1761_v57 = vadd.f32 %v1760_v28, %v1759_v56  ;;  %v1771_v22 = vadd.f32 %v1720_v58, %v1719_v10  ;;  %v2233_v12 = vpop.f32.mrb[12].mxu0 }
 0x177   :  { %v1928_v17 = vunpack.c.l.b16 %v1873_v59  ;;  %v1769_v53 = vrot.slane %v1768_v16, 1  ;;  %v1779_v33 = vrot.slane %v1778_v2, 4  ;;  %v1641_v23 = vadd.f32 %v2233_v12, %v3063_v8  ;;  %v1632_v37 = vpop.f32.mrb[13].mxu0 }
 0x178   :  { %v1927_v14 = vunpack.c.l.b16 %v1872_v6  ;;  %v1762_v47 = vrot.slane %v1761_v57, 1  ;;  %v1772_v3 = vrot.slane %v1771_v22, 4  ;;  %v1633_v20 = vadd.f32 %v3063_v8, %v1632_v37  ;;  %v2234_v9 = vpop.f32.mrb[14].mxu0 }
 0x179   :  { %v1770_v21 = vadd.f32 %v1769_v53, %v1768_v16  ;;  %v1780_v32 = vadd.f32 %v1779_v33, %v1778_v2  ;;  %v1644_v34 = vadd.f32 %v2234_v9, %v3063_v8  ;;  %v1635_v18 = vpop.f32.mrb[15].mxu0  ;;  %v1725_v60 = vmax.f32 %v1641_v23, 0.0 }
 0x17a   :  { %v1944_v4 = vsel %vm1943_vm7, %v1928_v17, %v1927_v14  ;;  %v1763_v36 = vadd.f32 %v1762_v47, %v1761_v57  ;;  %v1773_v1 = vadd.f32 %v1772_v3, %v1771_v22  ;;  %v1636_v42 = vadd.f32 %v3063_v8, %v1635_v18 }
 0x17b   :  { %v1859_v40 = vmul.f32 0.0625, %v1770_v21  ;;  %v1781_v15 = vrot.slane %v1780_v32, 2  ;;  %v1726_v13 = vmax.f32 %v1644_v34, 0.0  ;;  %v1723_v49 = vmax.f32 %v1633_v20, 0.0 }
 0x17c   :  { %v1858_v44 = vmul.f32 0.0625, %v1763_v36  ;;  %v1774_v46 = vrot.slane %v1773_v1, 2  ;;  %v1724_v7 = vmax.f32 %v1636_v42, 0.0 }
 0x17d   :  { %v1875_v51 = vpack.c.bf16 %v1859_v40, %v1859_v40  ;;  %v1782_v52 = vadd.f32 %v1781_v15, %v1780_v32  ;;  %v1792_v41 = vadd.f32 %v1726_v13, %v1725_v60 }
 0x17e   :  { %v1874_v11 = vpack.c.bf16 %v1858_v44, %v1858_v44  ;;  %v1775_v38 = vadd.f32 %v1774_v46, %v1773_v1  ;;  %v2237_v35 = vpop.f32.mrb[16].mxu0  ;;  %v1785_v24 = vadd.f32 %v1724_v7, %v1723_v49 }
 0x17f   :  { %v1783_v43 = vrot.slane %v1782_v52, 1  ;;  %v1793_v50 = vrot.slane %v1792_v41, 4  ;;  %v1648_v25 = vpop.f32.mrb[17].mxu0  ;;  %v1930_v0 = vunpack.c.l.b16 %v1875_v51  ;;  %v1657_v27 = vadd.f32 %v2237_v35, %v3063_v8 }
 0x180   :  { %v1929_v29 = vunpack.c.l.b16 %v1874_v11  ;;  %v1776_v26 = vrot.slane %v1775_v38, 1  ;;  %v2238_v63 = vpop.f32.mrb[18].mxu0  ;;  %v1786_v62 = vrot.slane %v1785_v24, 4  ;;  %v1649_v5 = vadd.f32 %v3063_v8, %v1648_v25 }
 0x181   :  { %v1784_v48 = vadd.f32 %v1783_v43, %v1782_v52  ;;  %v1794_v61 = vadd.f32 %v1793_v50, %v1792_v41  ;;  %v1660_v19 = vadd.f32 %v2238_v63, %v3063_v8  ;;  %v1651_v39 = vpop.f32.mrb[19].mxu0  ;;  %v1729_v45 = vmax.f32 %v1657_v27, 0.0 }
 0x182   :  { %v1946_v56 = vsel %vm1945_vm8, %v1929_v29, %v1944_v4  ;;  %v1777_v55 = vadd.f32 %v1776_v26, %v1775_v38  ;;  %v1787_v54 = vadd.f32 %v1786_v62, %v1785_v24  ;;  %v1652_v58 = vadd.f32 %v3063_v8, %v1651_v39 }
 0x183   :  { %v1861_v30 = vmul.f32 0.0625, %v1784_v48  ;;  %v1795_v31 = vrot.slane %v1794_v61, 2  ;;  %v1730_v28 = vmax.f32 %v1660_v19, 0.0  ;;  %v1948_v59 = vsel %vm1947_vm9, %v1930_v0, %v1946_v56 }
 0x184   :  { %v1860_v10 = vmul.f32 0.0625, %v1777_v55  ;;  %v1788_v2 = vrot.slane %v1787_v54, 2  ;;  %v1727_v12 = vmax.f32 %v1649_v5, 0.0  ;;  %v1728_v17 = vmax.f32 %v1652_v58, 0.0 }
 0x185   :  { %v1796_v16 = vadd.f32 %v1795_v31, %v1794_v61  ;;  %v1806_v6 = vadd.f32 %v1730_v28, %v1729_v45  ;;  %v1877_v57 = vpack.c.bf16 %v1861_v30, %v1861_v30 }
 0x186   :  { %v1876_v22 = vpack.c.bf16 %v1860_v10, %v1860_v10  ;;  %v2241_v53 = vpop.f32.mrb[20].mxu0  ;;  %v1789_v23 = vadd.f32 %v1788_v2, %v1787_v54  ;;  %v1799_v3 = vadd.f32 %v1728_v17, %v1727_v12 }
 0x187   :  { %v1797_v33 = vrot.slane %v1796_v16, 1  ;;  %v1807_v37 = vrot.slane %v1806_v6, 4  ;;  %v1664_v14 = vpop.f32.mrb[21].mxu0  ;;  %v1673_v20 = vadd.f32 %v2241_v53, %v3063_v8  ;;  %v1932_v1 = vunpack.c.l.b16 %v1877_v57 }
 0x188   :  { %v1931_v47 = vunpack.c.l.b16 %v1876_v22  ;;  %v1665_v9 = vadd.f32 %v3063_v8, %v1664_v14  ;;  %v2242_v21 = vpop.f32.mrb[22].mxu0  ;;  %v1790_v34 = vrot.slane %v1789_v23, 1  ;;  %v1800_v60 = vrot.slane %v1799_v3, 4 }
 0x189   :  { %v1798_v32 = vadd.f32 %v1797_v33, %v1796_v16  ;;  %v1808_v18 = vadd.f32 %v1807_v37, %v1806_v6  ;;  %v1676_v4 = vadd.f32 %v2242_v21, %v3063_v8  ;;  %v1667_v36 = vpop.f32.mrb[23].mxu0  ;;  %v1733_v40 = vmax.f32 %v1673_v20, 0.0 }
 0x18a   :  { %v1668_v15 = vadd.f32 %v3063_v8, %v1667_v36  ;;  %v1791_v42 = vadd.f32 %v1790_v34, %v1789_v23  ;;  %v1801_v49 = vadd.f32 %v1800_v60, %v1799_v3  ;;  %v1731_v51 = vmax.f32 %v1665_v9, 0.0 }
 0x18b   :  { %v1863_v13 = vmul.f32 0.0625, %v1798_v32  ;;  %v1809_v44 = vrot.slane %v1808_v18, 2  ;;  %v1734_v46 = vmax.f32 %v1676_v4, 0.0  ;;  %v1950_v41 = vsel %vm1949_vm10, %v1931_v47, %v1948_v59 }
 0x18c   :  { %v1732_v52 = vmax.f32 %v1668_v15, 0.0  ;;  %v1862_v7 = vmul.f32 0.0625, %v1791_v42  ;;  %v1802_v43 = vrot.slane %v1801_v49, 2  ;;  %v1952_v25 = vsel %vm1951_vm11, %v1932_v1, %v1950_v41 }
 0x18d   :  { %v1810_v11 = vadd.f32 %v1809_v44, %v1808_v18  ;;  %v1820_v38 = vadd.f32 %v1734_v46, %v1733_v40  ;;  %v1879_v35 = vpack.c.bf16 %v1863_v13, %v1863_v13 }
 0x18e   :  { %v1813_v50 = vadd.f32 %v1732_v52, %v1731_v51  ;;  %v2245_v24 = vpop.f32.mrb[24].mxu0  ;;  %v1878_v0 = vpack.c.bf16 %v1862_v7, %v1862_v7  ;;  %v1803_v48 = vadd.f32 %v1802_v43, %v1801_v49 }
 0x18f   :  { %v1811_v29 = vrot.slane %v1810_v11, 1  ;;  %v1821_v26 = vrot.slane %v1820_v38, 4  ;;  %v1689_v27 = vadd.f32 %v2245_v24, %v3063_v8  ;;  %v1680_v63 = vpop.f32.mrb[25].mxu0  ;;  %v1934_v5 = vunpack.c.l.b16 %v1879_v35 }
 0x190   :  { %v1814_v61 = vrot.slane %v1813_v50, 4  ;;  %v1681_v62 = vadd.f32 %v3063_v8, %v1680_v63  ;;  %v2246_v19 = vpop.f32.mrb[26].mxu0  ;;  %v1933_v39 = vunpack.c.l.b16 %v1878_v0  ;;  %v1804_v30 = vrot.slane %v1803_v48, 1 }
 0x191   :  { %v1812_v56 = vadd.f32 %v1811_v29, %v1810_v11  ;;  %v1822_v55 = vadd.f32 %v1821_v26, %v1820_v38  ;;  %v1683_v45 = vpop.f32.mrb[27].mxu0  ;;  %v1737_v54 = vmax.f32 %v1689_v27, 0.0  ;;  %v1692_v28 = vadd.f32 %v2246_v19, %v3063_v8 }
 0x192   :  { %v1815_v31 = vadd.f32 %v1814_v61, %v1813_v50  ;;  %v1684_v59 = vadd.f32 %v3063_v8, %v1683_v45  ;;  %v1954_v16 = vsel %vm1953_vm12, %v1933_v39, %v1952_v25  ;;  %v1805_v2 = vadd.f32 %v1804_v30, %v1803_v48 }
 0x193   :  { %v1865_v10 = vmul.f32 0.0625, %v1812_v56  ;;  %v1823_v58 = vrot.slane %v1822_v55, 2  ;;  %v1738_v57 = vmax.f32 %v1692_v28, 0.0  ;;  %v3100_v22 = vsel %vm1955_vm13, %v1934_v5, %v1954_v16 }
 0x194   :  { %v1816_v6 = vrot.slane %v1815_v31, 2  ;;  %v1735_v53 = vmax.f32 %v1681_v62, 0.0  ;;  %v1736_v33 = vmax.f32 %v1684_v59, 0.0  ;;  %v1864_v23 = vmul.f32 0.0625, %v1805_v2 }
 0x195   :  { %v1881_v12 = vpack.c.bf16 %v1865_v10, %v1865_v10  ;;  %v1824_v17 = vadd.f32 %v1823_v58, %v1822_v55  ;;  %v1834_v14 = vadd.f32 %v1738_v57, %v1737_v54 }
 0x196   :  { %v1817_v37 = vadd.f32 %v1816_v6, %v1815_v31  ;;  %v2249_v47 = vpop.f32.mrb[28].mxu0  ;;  %v1827_v9 = vadd.f32 %v1736_v33, %v1735_v53  ;;  %v1880_v34 = vpack.c.bf16 %v1864_v23, %v1864_v23 }
 0x197   :  { %v1936_v3 = vunpack.c.l.b16 %v1881_v12  ;;  %v1825_v20 = vrot.slane %v1824_v17, 1  ;;  %v1705_v21 = vadd.f32 %v2249_v47, %v3063_v8  ;;  %v1696_v32 = vpop.f32.mrb[29].mxu0  ;;  %v1835_v4 = vrot.slane %v1834_v14, 4 }
 0x198   :  { %v1818_v18 = vrot.slane %v1817_v37, 1  ;;  %v1697_v36 = vadd.f32 %v3063_v8, %v1696_v32  ;;  %v2250_v1 = vpop.f32.mrb[30].mxu0  ;;  %v1828_v40 = vrot.slane %v1827_v9, 4  ;;  %v1935_v42 = vunpack.c.l.b16 %v1880_v34 }
 0x199   :  { %v1826_v60 = vadd.f32 %v1825_v20, %v1824_v17  ;;  %v1708_v15 = vadd.f32 %v2250_v1, %v3063_v8  ;;  %v1699_v13 = vpop.f32.mrb[31].mxu0  ;;  %v1836_v46 = vadd.f32 %v1835_v4, %v1834_v14  ;;  %v1741_v49 = vmax.f32 %v1705_v21, 0.0 }
 0x19a   :  { %v1819_v44 = vadd.f32 %v1818_v18, %v1817_v37  ;;  %v1829_v52 = vadd.f32 %v1828_v40, %v1827_v9  ;;  %v1700_v7 = vadd.f32 %v3063_v8, %v1699_v13  ;;  %v1957_v11 = vsel %vm1943_vm7, %v1936_v3, %v1935_v42 }
 0x19b   :  { %v1867_v51 = vmul.f32 0.0625, %v1826_v60  ;;  %v1742_v41 = vmax.f32 %v1708_v15, 0.0  ;;  %v1837_v35 = vrot.slane %v1836_v46, 2  ;;  %v1739_v43 = vmax.f32 %v1697_v36, 0.0  ;;  %v2103_v36 = vld [vmem:[%s3134_s4] ss:$0 sm:$0xff] }
 0x19c   :  { %v1866_v38 = vmul.f32 0.0625, %v1819_v44  ;;  %v1830_v24 = vrot.slane %v1829_v52, 2  ;;  %v1740_v0 = vmax.f32 %v1700_v7, 0.0  ;;  %s2451_s4 = scalar_lea.vmem %s2075_s22, 256 }
 0x19d   :  { %v1883_v50 = vpack.c.bf16 %v1867_v51, %v1867_v51  ;;  %v1848_v25 = vadd.f32 %v1742_v41, %v1741_v49  ;;  %v1838_v26 = vadd.f32 %v1837_v35, %v1836_v46  ;;  %p2452_p0 = scmp.ne.s32.totalorder %s2075_s22, %s2451_s4  ;;  %p2457_p2 = scmp.lt.s32.totalorder %s2451_s4, %s2451_s4 }
 0x19e   :  { %v1882_v29 = vpack.c.bf16 %v1866_v38, %v1866_v38  ;;  %v1831_v27 = vadd.f32 %v1830_v24, %v1829_v52  ;;  %v1841_v48 = vadd.f32 %v1740_v0, %v1739_v43 }
 0x19f   :  { %v1849_v63 = vrot.slane %v1848_v25, 4  ;;  %v1839_v62 = vrot.slane %v1838_v26, 1  ;;  %v1938_v19 = vunpack.c.l.b16 %v1883_v50  ;;  %p2458_p3 = por %p2457_p2, %p2456_p1 }
 0x1a0   :  { %v1937_v61 = vunpack.c.l.b16 %v1882_v29  ;;  %v1832_v39 = vrot.slane %v1831_v27, 1  ;;  %v1842_v8 = vrot.slane %v1841_v48, 4 }
 0x1a1   :  { %v1850_v56 = vadd.f32 %v1849_v63, %v1848_v25  ;;  %v1840_v45 = vadd.f32 %v1839_v62, %v1838_v26  ;;  %p2459_p4 = pnand %p2458_p3, %p2452_p0 }
 0x1a2   :  { %v1958_v55 = vsel %vm1945_vm8, %v1937_v61, %v1957_v11  ;;  %v1833_v5 = vadd.f32 %v1832_v39, %v1831_v27  ;;  %v1843_v31 = vadd.f32 %v1842_v8, %v1841_v48 }
 0x1a3   :  { %v1851_v30 = vrot.slane %v1850_v56, 2  ;;  %v1959_v54 = vsel %vm1947_vm9, %v1938_v19, %v1958_v55  ;;  %v1869_v28 = vmul.f32 0.0625, %v1840_v45 }
 0x1a4   :  { %v1868_v10 = vmul.f32 0.0625, %v1833_v5  ;;  %v1844_v59 = vrot.slane %v1843_v31, 2 }
 0x1a5   :  { %v1852_v58 = vadd.f32 %v1851_v30, %v1850_v56  ;;  %v1885_v16 = vpack.c.bf16 %v1869_v28, %v1869_v28 }
 0x1a6   :  { %v1884_v2 = vpack.c.bf16 %v1868_v10, %v1868_v10  ;;  %v1845_v57 = vadd.f32 %v1844_v59, %v1843_v31 }
 0x1a7   :  { %v1853_v6 = vrot.slane %v1852_v58, 1  ;;  %v1940_v33 = vunpack.c.l.b16 %v1885_v16 }
 0x1a8   :  { %v1939_v12 = vunpack.c.l.b16 %v1884_v2  ;;  %v1846_v53 = vrot.slane %v1845_v57, 1 }
 0x1a9   :  { %v1854_v17 = vadd.f32 %v1853_v6, %v1852_v58 }
 0x1aa   :  { %v1847_v37 = vadd.f32 %v1846_v53, %v1845_v57  ;;  %v1960_v14 = vsel %vm1949_vm10, %v1939_v12, %v1959_v54 }
 0x1ab   :  { %v1871_v23 = vmul.f32 0.0625, %v1854_v17  ;;  %v1961_v47 = vsel %vm1951_vm11, %v1940_v33, %v1960_v14 }
 0x1ac   :  { %v1870_v3 = vmul.f32 0.0625, %v1847_v37 }
 0x1ad   :  { %v1887_v20 = vpack.c.bf16 %v1871_v23, %v1871_v23 }
 0x1ae   :  { %v1886_v9 = vpack.c.bf16 %v1870_v3, %v1870_v3 }
 0x1af   :  { %v1942_v32 = vunpack.c.l.b16 %v1887_v20 }
 0x1b0   :  { %v1941_v21 = vunpack.c.l.b16 %v1886_v9 }
 0x1b2   :  { %v1962_v34 = vsel %vm1953_vm12, %v1941_v21, %v1961_v47 }
 0x1b3   :  { %v1963_v18 = vsel %vm1955_vm13, %v1942_v32, %v1962_v34 }
 0x1b4   :  { %v1964_v4 = vpack.c.b16 %v1963_v18, %v3100_v22 }
 0x1b6   :  { %2268 = vmatmul.mubr.bf16.vlgmr.msra.gmra.mrb[0].mxu1 %v1964_v4 }
 0x289   :  { %v2048_v1 = vpop.f32.mrb[0].mxu1 }
 0x28a   :  { %v2049_v60 = vadd.f32 %v2103_v36, %v2048_v1  ;;  %v2269_v40 = vpop.f32.mrb[1].mxu1 }
 0x28b   :  { %v2051_v15 = vpop.f32.mrb[2].mxu1 }
 0x28c   :  { %v2052_v13 = vadd.f32 %v2103_v36, %v2051_v15  ;;  %v2270_v42 = vpop.f32.mrb[3].mxu1  ;;  %v2055_v44 = vmul.f32 %v2049_v60, %v2049_v60 }
 0x28e   :  { %2057 = vadd.xlane.f32.xlu0 %v2055_v44  ;;  %v2056_v46 = vmul.f32 %v2052_v13, %v2052_v13 }
 0x290   :  { %2059 = vadd.xlane.f32.xlu1 %v2056_v46 }
 0x31b   :  { %v2058_v49 = vpop.xlane.xlu0 %2057 }
 0x31c   :  { %v2061_v51 = vmax.f32 %v2058_v49, 1e-24 }
 0x31d   :  { %v2060_v52 = vpop.xlane.xlu1 %2059 }
 0x31e   :  { %2447 = vrsqrt.f32 %v2061_v51  ;;  %v2062_v22 = vmax.f32 %v2060_v52, 1e-24 }
 0x320   :  { %2449 = vrsqrt.f32 %v2062_v22 }
 0x328   :  { %v2448_v41 = vpop.eup %2447 }
 0x329   :  { %v2065_v7 = vmul.f32 %v2448_v41, %v2049_v60 }
 0x32a   :  { %v2450_v11 = vpop.eup %2449 }
 0x32b   :  { %v2066_v38 = vmul.f32 %v2450_v11, %v2052_v13  ;;  %2067 = vst [vmem:[#allocation2] sm:$0xff] %v2065_v7 }
 0x32d   :  { %2068 = vst [vmem:[#allocation2 + $0x8] sm:$0xff] %v2066_v38 }
 0x32e   :  { %2462 = shalt.err (!%p2459_p4)
}
 0x32f   :  { %s2463_s25 = scalar_lea.hbm %s3135_s5, 256 }
 0x330   :  { %p2464_p5 = scmp.ne.s32.totalorder %s3135_s5, %s2463_s25  ;;  %p2467_p6 = scmp.lt.u32.totalorder %s2463_s25, %s3135_s5 }
 0x332   :  { %p2469_p7 = pnand %p2467_p6, %p2464_p5 }
 0x334   :  { %2472 = shalt.err (!%p2469_p7)
}
 0x335   :  { %s2480_s26 = smov 128  }
 0x336   :  { %2080 = dma.vmem_to_hbm [thread:$0]  %s2075_s22, 256, %s3135_s5, [#allocation3], %s2480_s26, %s2480_s26, %s2476_s8  }
 0x337   :  { %2473 = dma.done.wait [#allocation3], 256  }
 0x338   :  { %2474 = vsyncadd [#allocation3], 4294967040 }
 0x339   :  { %2084 = vsyncpa [#allocation3], 1 }

</bundles_post_ra>
